<compile_context>
chip_gen: v7x
topology: tpu7x:2x2x1
jax: 0.10.0
libtpu: 0.0.40
codegen_flags: <defaults>
</compile_context>

<pallas_src>
import functools

import jax
import jax.numpy as jnp
from jax.experimental import pallas as pl
from jax.experimental.pallas import tpu as pltpu


def _layernorm(y, gamma, beta, eps):
    mu = jnp.mean(y, axis=-1, keepdims=True)
    var = jnp.mean((y - mu) ** 2, axis=-1, keepdims=True)
    return (y - mu) * jax.lax.rsqrt(var + eps) * gamma + beta


def _sa_block_kernel(
    x_ref,                      # (Bt, S, D)  batch-first activation tile
    wqkv_ref, bqkv_ref,         # (D, 3D) compute dtype (q cols pre-scaled), (1, 3D) f32
    wo_ref, bo_ref,             # (H, HD, D) compute dtype, (1, D) f32
    g1_ref, be1_ref,            # (1, D) f32   LayerNorm1
    w1_ref, bf1_ref,            # (D, F) compute dtype, (1, F) f32
    w2_ref, bf2_ref,            # (F, D) compute dtype, (1, D) f32
    g2_ref, be2_ref,            # (1, D) f32   LayerNorm2
    out_ref, xint_ref,          # (Bt, S, D)
    *, nhead, eps):
    Bt, S, D = x_ref.shape
    H = nhead
    HD = D // H
    cdt = wqkv_ref.dtype                          # MXU operand dtype (bf16-friendly)

    x = x_ref[...]                                # (Bt, S, D)
    xf = x.reshape(Bt * S, D)                     # free merge of leading dims
    x32 = xf.astype(jnp.float32)

    # ---- packed QKV projection: one MXU matmul with M = Bt*S, N = 3D ----
    qkv = jnp.dot(xf.astype(cdt), wqkv_ref[...],
                  preferred_element_type=jnp.float32) + bqkv_ref[...]   # (Bt*S, 3D) f32
    q = qkv[:, :D].astype(cdt).reshape(Bt, S, D)          # 1/sqrt(HD) already folded in
    k = qkv[:, D:2 * D].astype(cdt).reshape(Bt, S, D)
    v = qkv[:, 2 * D:].astype(cdt).reshape(Bt, S, D)

    wo = wo_ref[...]                                       # (H, HD, D)

    # ---- multi-head attention: batched over Bt, static loop over the (few) heads ----
    att = jnp.zeros((Bt * S, D), jnp.float32)
    for h in range(H):
        qh = q[:, :, h * HD:(h + 1) * HD]                  # (Bt, S, HD) static lane slice
        kh = k[:, :, h * HD:(h + 1) * HD]
        vh = v[:, :, h * HD:(h + 1) * HD]
        s = jnp.einsum('bqd,bkd->bqk', qh, kh,
                       preferred_element_type=jnp.float32)             # (Bt, S, S) f32
        m = jnp.max(s, axis=-1, keepdims=True)
        p = jnp.exp(s - m)
        l = jnp.sum(p, axis=-1, keepdims=True)
        ctx = jnp.einsum('bqk,bkd->bqd', p.astype(cdt), vh,
                         preferred_element_type=jnp.float32)            # (Bt, S, HD)
        ctx = ctx / l                                      # denom on (S,HD), not (S,S)
        # out-projection contribution of head h (no (H,S,D) intermediate)
        att = att + jnp.dot(ctx.reshape(Bt * S, HD).astype(cdt), wo[h],
                            preferred_element_type=jnp.float32)         # (Bt*S, D) f32
    att = att + bo_ref[...]

    # ---- residual + LayerNorm1 (f32 statistics), full-block store ----
    x_int = _layernorm(x32 + att, g1_ref[...], be1_ref[...], eps)       # (Bt*S, D) f32
    xint_ref[...] = x_int.reshape(Bt, S, D).astype(xint_ref.dtype)

    # ---- feed-forward (relu), residual against ORIGINAL x, LayerNorm2 ----
    h1 = jnp.dot(x_int.astype(cdt), w1_ref[...],
                 preferred_element_type=jnp.float32) + bf1_ref[...]     # (Bt*S, F)
    h1 = jnp.maximum(h1, 0.0)
    ff = jnp.dot(h1.astype(cdt), w2_ref[...],
                 preferred_element_type=jnp.float32) + bf2_ref[...]     # (Bt*S, D)
    out = _layernorm(x32 + ff, g2_ref[...], be2_ref[...], eps)
    out_ref[...] = out.reshape(Bt, S, D).astype(out_ref.dtype)


def _prep_params(params, nhead, compute_dtype):
    """Reorganize PyTorch-layout params into kernel-friendly layouts (trace time, free)."""
    D = params["wo"].shape[0]
    HD = D // nhead
    scale = 1.0 / (HD ** 0.5)

    wqkv_t = jnp.transpose(params["wqkv"]).astype(jnp.float32)   # (D, 3D), cols [q|k|v]
    bqkv = params["bqkv"].reshape(1, 3 * D).astype(jnp.float32)
    # Fold the 1/sqrt(HD) query scaling into the q columns of the packed projection.
    col_scale = jnp.concatenate([jnp.full((3 * D,), 1.0, jnp.float32).at[:D].set(scale)])
    wqkv_t = wqkv_t * col_scale[None, :]
    bqkv = bqkv * col_scale[None, :]

    wo_heads = jnp.transpose(params["wo"]).reshape(nhead, HD, D)  # (H, HD, D)

    cast = lambda a: a.astype(compute_dtype)
    f32 = lambda a: a.astype(jnp.float32)
    return dict(
        wqkv=cast(wqkv_t), bqkv=bqkv,
        wo=cast(wo_heads), bo=f32(params["bo"]),
        g1=f32(params["g1"]), be1=f32(params["be1"]),
        w1=cast(jnp.transpose(params["w1"])), bf1=f32(params["bf1"]),   # (D, F), (1, F)
        w2=cast(jnp.transpose(params["w2"])), bf2=f32(params["bf2"]),   # (F, D), (1, D)
        g2=f32(params["g2"]), be2=f32(params["be2"]),
    )


def _default_vmem_limit_bytes():
    """Generation-aware VMEM budget (None -> leave the compiler default alone)."""
    try:
        kind = jax.devices()[0].device_kind.lower()
    except Exception:
        return None
    if "v5" in kind or "v6" in kind:
        return 96 * 1024 * 1024          # 128 MiB physical; leave headroom
    if "7" in kind:
        return 48 * 1024 * 1024          # v7x: 64 MiB physical per TensorCore
    return None


def _pick_block_b(B, S, D, F, itemsize, budget_bytes):
    divisors = [d for d in range(1, B + 1) if B % d == 0]
    # Prefer >= 2 grid steps so both v7x TensorCores can be fed ("parallel" axis).
    cands = [d for d in divisors if B // d >= 2] or divisors

    def est(bt):
        io = 3 * 2 * bt * S * D * itemsize                       # x + 2 outs, 2x buffered
        work = bt * S * (5 * D + F) * 4 + bt * S * S * 4          # f32 working set
        return io + work

    fitting = [d for d in cands if est(d) <= budget_bytes]
    return max(fitting) if fitting else min(cands)


def self_attention_block_batch_first(x_bsd, params, *, nhead, eps=1e-5, block_b=None,
                                     compute_dtype=None, single_buffer_weights=False,
                                     vmem_limit_bytes=None):
    """Core entry point: x_bsd is (B, S, D) batch-first. Returns (out, x_int), (B, S, D)."""
    B, S, D = x_bsd.shape
    assert D % nhead == 0, "d_model must be divisible by nhead"
    if compute_dtype is None:
        compute_dtype = x_bsd.dtype
    kp = _prep_params(params, nhead, compute_dtype)
    F = kp["w1"].shape[1]

    if vmem_limit_bytes is None:
        vmem_limit_bytes = _default_vmem_limit_bytes()
    budget = (vmem_limit_bytes or 32 * 1024 * 1024) // 2
    if block_b is None:
        block_b = _pick_block_b(B, S, D, F, jnp.dtype(x_bsd.dtype).itemsize, budget)
    assert B % block_b == 0, "block_b must divide B"

    x_spec = pl.BlockSpec((block_b, S, D), lambda i: (i, 0, 0))

    def wspec(a):
        nd = a.ndim
        idx = lambda i, _nd=nd: (0,) * _nd
        if single_buffer_weights:
            # Constant blocks never change across the grid -> single buffer (v7x VMEM win).
            return pl.BlockSpec(a.shape, idx, pipeline_mode=pl.Buffered(1))
        return pl.BlockSpec(a.shape, idx)

    weights = [kp["wqkv"], kp["bqkv"], kp["wo"], kp["bo"], kp["g1"], kp["be1"],
               kp["w1"], kp["bf1"], kp["w2"], kp["bf2"], kp["g2"], kp["be2"]]

    kernel = functools.partial(_sa_block_kernel, nhead=nhead, eps=eps)

    cp_kwargs = dict(dimension_semantics=("parallel",))
    if vmem_limit_bytes is not None:
        cp_kwargs["vmem_limit_bytes"] = vmem_limit_bytes

    out_bsd, xint_bsd = pl.pallas_call(
        kernel,
        out_shape=(jax.ShapeDtypeStruct((B, S, D), x_bsd.dtype),
                   jax.ShapeDtypeStruct((B, S, D), x_bsd.dtype)),
        grid_spec=pltpu.PrefetchScalarGridSpec(
            num_scalar_prefetch=0,
            grid=(B // block_b,),
            in_specs=[x_spec] + [wspec(a) for a in weights],
            out_specs=[x_spec, x_spec],
        ),
        compiler_params=pltpu.CompilerParams(**cp_kwargs),
    )(x_bsd, *weights)

    return out_bsd, xint_bsd


def self_attention_block(tgt, params, *, nhead, eps=1e-5, **kwargs):
    """tgt: (S, B, D) sequence-first (what nn.MultiheadAttention sees in the module).
    Returns (out, x_intermediate), both (S, B, D).  Layout plumbing stays outside the
    kernel; callers that already hold batch-first data can use
    self_attention_block_batch_first directly and skip these transposes."""
    x_bsd = jnp.transpose(tgt, (1, 0, 2))
    out_bsd, xint_bsd = self_attention_block_batch_first(
        x_bsd, params, nhead=nhead, eps=eps, **kwargs)
    return jnp.transpose(out_bsd, (1, 0, 2)), jnp.transpose(xint_bsd, (1, 0, 2))


# ----------------------------- validation helpers -----------------------------

def reference(tgt, params, *, nhead, eps=1e-5):
    """Pure-JAX reference (mirrors the PyTorch forward), HIGHEST matmul precision."""
    S, B, D = tgt.shape
    HD = D // nhead
    hi = jax.lax.Precision.HIGHEST
    x = tgt.astype(jnp.float32)

    qkv = jnp.einsum("sbd,ed->sbe", x, params["wqkv"], precision=hi) + params["bqkv"][0]
    q, k, v = qkv[..., :D], qkv[..., D:2 * D], qkv[..., 2 * D:]

    def heads(t):  # (S, B, D) -> (B, H, S, HD)
        return jnp.transpose(t.reshape(S, B, nhead, HD), (1, 2, 0, 3))

    qh, kh, vh = heads(q), heads(k), heads(v)
    scores = jnp.einsum("bhsd,bhtd->bhst", qh, kh, precision=hi) / (HD ** 0.5)
    p = jax.nn.softmax(scores, axis=-1)
    attn = jnp.einsum("bhst,bhtd->bhsd", p, vh, precision=hi)
    attn = jnp.transpose(attn, (2, 0, 1, 3)).reshape(S, B, D)
    attn = jnp.einsum("sbd,ed->sbe", attn, params["wo"], precision=hi) + params["bo"][0]

    def ln(y, g, b):
        mu = jnp.mean(y, axis=-1, keepdims=True)
        var = jnp.mean((y - mu) ** 2, axis=-1, keepdims=True)
        return (y - mu) * jax.lax.rsqrt(var + eps) * g[0] + b[0]

    x_int = ln(x + attn, params["g1"], params["be1"])
    h1 = jnp.maximum(jnp.einsum("sbd,fd->sbf", x_int, params["w1"], precision=hi)
                     + params["bf1"][0], 0.0)
    ff = jnp.einsum("sbf,df->sbd", h1, params["w2"], precision=hi) + params["bf2"][0]
    out = ln(x + ff, params["g2"], params["be2"])
    return out, x_int


def make_params(key, d_model, nhead, dim_feedforward):
    ks = jax.random.split(key, 8)
    D, F = d_model, dim_feedforward
    init = lambda k, shape, fan_in: (jax.random.normal(k, shape, jnp.float32)
                                     / jnp.sqrt(jnp.float32(fan_in)))
    return {
        "wqkv": init(ks[0], (3 * D, D), D),        # MHA in_proj_weight (3D, D)
        "bqkv": init(ks[1], (1, 3 * D), D) * 0.1,  # MHA in_proj_bias
        "wo":   init(ks[2], (D, D), D),            # MHA out_proj weight (out, in)
        "bo":   init(ks[3], (1, D), D) * 0.1,
        "g1":   jnp.ones((1, D), jnp.float32),
        "be1":  jnp.zeros((1, D), jnp.float32),
        "w1":   init(ks[4], (F, D), D),            # linear_ff_sa1 (F, D)
        "bf1":  init(ks[5], (1, F), D) * 0.1,
        "w2":   init(ks[6], (D, F), F),            # linear_ff_sa2 (D, F)
        "bf2":  init(ks[7], (1, D), F) * 0.1,
        "g2":   jnp.ones((1, D), jnp.float32),
        "be2":  jnp.zeros((1, D), jnp.float32),
    }


def _run_case(key, S, B, D, H, F, tol, **kwargs):
    kx, kp = jax.random.split(key)
    tgt = jax.random.normal(kx, (S, B, D), jnp.float32)      # (seq, batch, d_model)
    params = make_params(kp, D, H, F)

    out, x_int = self_attention_block(tgt, params, nhead=H, eps=1e-5, **kwargs)
    out = jax.block_until_ready(out)
    x_int = jax.block_until_ready(x_int)

    ref_out, ref_int = reference(tgt, params, nhead=H, eps=1e-5)
    err_o = float(jnp.max(jnp.abs(out.astype(jnp.float32) - ref_out)))
    err_i = float(jnp.max(jnp.abs(x_int.astype(jnp.float32) - ref_int)))
    assert err_o <= tol, f"output mismatch: max abs err {err_o} > {tol}"
    assert err_i <= tol, f"intermediate mismatch: max abs err {err_i} > {tol}"


if __name__ == "__main__":
    key = jax.random.PRNGKey(0)
    k1, k2, k3 = jax.random.split(key, 3)

    # f32 path.  Tolerance 2e-2 absorbs TPU MXU default-precision (bf16-pass) f32
    # matmuls in either the kernel or the reference; LayerNorm outputs are O(1).
    _run_case(k1, S=8, B=2, D=32, H=4, F=64, tol=2e-2)
    # Larger case: batch tiling (block_b=8, grid of 2) and lane-dense d_model.
    _run_case(k2, S=16, B=16, D=128, H=4, F=256, tol=2e-2)
    # bf16 MXU-operand path (perf-review item); f32 stats kept, smoke-level tolerance.
    _run_case(k3, S=16, B=8, D=128, H=8, F=256, tol=1e-1, compute_dtype=jnp.bfloat16)

    print("KERNEL_OK")
</pallas_src>

<mosaic_0001>
module attributes {stable_mosaic.version = 11 : i64} {
  func.func @_sa_block_kernel(%arg0: i32, %arg1: memref<1x8x32xf32, #tpu.memory_space<vmem>>, %arg2: memref<32x96xf32, #tpu.memory_space<vmem>>, %arg3: memref<1x96xf32, #tpu.memory_space<vmem>>, %arg4: memref<4x8x32xf32, #tpu.memory_space<vmem>>, %arg5: memref<1x32xf32, #tpu.memory_space<vmem>>, %arg6: memref<1x32xf32, #tpu.memory_space<vmem>>, %arg7: memref<1x32xf32, #tpu.memory_space<vmem>>, %arg8: memref<32x64xf32, #tpu.memory_space<vmem>>, %arg9: memref<1x64xf32, #tpu.memory_space<vmem>>, %arg10: memref<64x32xf32, #tpu.memory_space<vmem>>, %arg11: memref<1x32xf32, #tpu.memory_space<vmem>>, %arg12: memref<1x32xf32, #tpu.memory_space<vmem>>, %arg13: memref<1x32xf32, #tpu.memory_space<vmem>>, %arg14: memref<1x8x32xf32, #tpu.memory_space<vmem>>, %arg15: memref<1x8x32xf32, #tpu.memory_space<vmem>>) attributes {dimension_semantics = [#tpu.dimension_semantics<parallel>], iteration_bounds = array<i64: 2>, scalar_prefetch = 0 : i64, scratch_operands = 0 : i64, tpu.core_type = #tpu.core_type<tc>, window_params = [{transform_indices = @transform_0, window_bounds = array<i64: 1, 8, 32>}, {pipeline_mode = #tpu.pipeline_mode<synchronous>, transform_indices = @transform_1, window_bounds = array<i64: 32, 96>}, {pipeline_mode = #tpu.pipeline_mode<synchronous>, transform_indices = @transform_2, window_bounds = array<i64: 1, 96>}, {pipeline_mode = #tpu.pipeline_mode<synchronous>, transform_indices = @transform_3, window_bounds = array<i64: 4, 8, 32>}, {pipeline_mode = #tpu.pipeline_mode<synchronous>, transform_indices = @transform_4, window_bounds = array<i64: 1, 32>}, {pipeline_mode = #tpu.pipeline_mode<synchronous>, transform_indices = @transform_5, window_bounds = array<i64: 1, 32>}, {pipeline_mode = #tpu.pipeline_mode<synchronous>, transform_indices = @transform_6, window_bounds = array<i64: 1, 32>}, {pipeline_mode = #tpu.pipeline_mode<synchronous>, transform_indices = @transform_7, window_bounds = array<i64: 32, 64>}, {pipeline_mode = #tpu.pipeline_mode<synchronous>, transform_indices = @transform_8, window_bounds = array<i64: 1, 64>}, {pipeline_mode = #tpu.pipeline_mode<synchronous>, transform_indices = @transform_9, window_bounds = array<i64: 64, 32>}, {pipeline_mode = #tpu.pipeline_mode<synchronous>, transform_indices = @transform_10, window_bounds = array<i64: 1, 32>}, {pipeline_mode = #tpu.pipeline_mode<synchronous>, transform_indices = @transform_11, window_bounds = array<i64: 1, 32>}, {pipeline_mode = #tpu.pipeline_mode<synchronous>, transform_indices = @transform_12, window_bounds = array<i64: 1, 32>}, {transform_indices = @transform_13, window_bounds = array<i64: 1, 8, 32>}, {transform_indices = @transform_14, window_bounds = array<i64: 1, 8, 32>}]} {
    %c0 = arith.constant 0 : index
    %c0_0 = arith.constant 0 : index
    %c0_1 = arith.constant 0 : index
    %0 = vector.load %arg1[%c0, %c0_0, %c0_1] : memref<1x8x32xf32, #tpu.memory_space<vmem>>, vector<1x8x32xf32>
    %1 = vector.shape_cast %0 : vector<1x8x32xf32> to vector<8x32xf32>
    %c0_2 = arith.constant 0 : index
    %c0_3 = arith.constant 0 : index
    %2 = vector.load %arg2[%c0_2, %c0_3] : memref<32x96xf32, #tpu.memory_space<vmem>>, vector<32x96xf32>
    %cst = arith.constant dense<0.000000e+00> : vector<8x96xf32>
    %3 = tpu.matmul %1, %2, %cst {dimension_numbers = #tpu.dot_dimension_numbers<[1], [0], [0], [1], [0, 0, 1, 1], [], []>} : vector<8x32xf32>, vector<32x96xf32>, vector<8x96xf32> -> vector<8x96xf32>
    %c0_4 = arith.constant 0 : index
    %c0_5 = arith.constant 0 : index
    %4 = vector.load %arg3[%c0_4, %c0_5] : memref<1x96xf32, #tpu.memory_space<vmem>>, vector<1x96xf32>
    %5 = vector.broadcast %4 : vector<1x96xf32> to vector<8x96xf32>
    %6 = arith.addf %3, %5 : vector<8x96xf32>
    %7 = vector.extract_strided_slice %6 {offsets = [0, 0], sizes = [8, 32], strides = [1, 1]} : vector<8x96xf32> to vector<8x32xf32>
    %8 = vector.shape_cast %7 : vector<8x32xf32> to vector<1x8x32xf32>
    %9 = vector.extract_strided_slice %6 {offsets = [0, 32], sizes = [8, 32], strides = [1, 1]} : vector<8x96xf32> to vector<8x32xf32>
    %10 = vector.shape_cast %9 : vector<8x32xf32> to vector<1x8x32xf32>
    %11 = vector.extract_strided_slice %6 {offsets = [0, 64], sizes = [8, 32], strides = [1, 1]} : vector<8x96xf32> to vector<8x32xf32>
    %12 = vector.shape_cast %11 : vector<8x32xf32> to vector<1x8x32xf32>
    %c0_6 = arith.constant 0 : index
    %c0_7 = arith.constant 0 : index
    %c0_8 = arith.constant 0 : index
    %13 = vector.load %arg4[%c0_6, %c0_7, %c0_8] : memref<4x8x32xf32, #tpu.memory_space<vmem>>, vector<4x8x32xf32>
    %cst_9 = arith.constant 0.000000e+00 : f32
    %14 = vector.broadcast %cst_9 : f32 to vector<8x32xf32>
    %15 = vector.extract_strided_slice %8 {offsets = [0, 0, 0], sizes = [1, 8, 8], strides = [1, 1, 1]} : vector<1x8x32xf32> to vector<1x8x8xf32>
    %16 = vector.extract_strided_slice %10 {offsets = [0, 0, 0], sizes = [1, 8, 8], strides = [1, 1, 1]} : vector<1x8x32xf32> to vector<1x8x8xf32>
    %17 = vector.extract_strided_slice %12 {offsets = [0, 0, 0], sizes = [1, 8, 8], strides = [1, 1, 1]} : vector<1x8x32xf32> to vector<1x8x8xf32>
    "tpu.trace_start"() <{level = 10 : i32, message = "bqd,bkd->bqk"}> : () -> ()
    %cst_10 = arith.constant dense<0.000000e+00> : vector<1x8x8xf32>
    %18 = tpu.matmul %15, %16, %cst_10 {dimension_numbers = #tpu.dot_dimension_numbers<[2], [2], [1], [1], [0, 0, 0, 1, 1, 1], [0], [0]>} : vector<1x8x8xf32>, vector<1x8x8xf32>, vector<1x8x8xf32> -> vector<1x8x8xf32>
    "tpu.trace_stop"() : () -> ()
    %cst_11 = arith.constant dense<0xFF800000> : vector<1x8xf32>
    %19 = vector.multi_reduction <maximumf>, %18, %cst_11 [2] : vector<1x8x8xf32> to vector<1x8xf32>
    %20 = vector.shape_cast %19 : vector<1x8xf32> to vector<1x8x1xf32>
    %21 = vector.broadcast %20 : vector<1x8x1xf32> to vector<1x8x8xf32>
    %22 = arith.subf %18, %21 : vector<1x8x8xf32>
    %23 = math.exp %22 : vector<1x8x8xf32>
    %cst_12 = arith.constant dense<0.000000e+00> : vector<1x8xf32>
    %24 = vector.multi_reduction <add>, %23, %cst_12 [2] : vector<1x8x8xf32> to vector<1x8xf32>
    %25 = vector.shape_cast %24 : vector<1x8xf32> to vector<1x8x1xf32>
    "tpu.trace_start"() <{level = 10 : i32, message = "bqk,bkd->bqd"}> : () -> ()
    %cst_13 = arith.constant dense<0.000000e+00> : vector<1x8x8xf32>
    %26 = tpu.matmul %23, %17, %cst_13 {dimension_numbers = #tpu.dot_dimension_numbers<[2], [1], [1], [2], [0, 0, 0, 1, 1, 2], [0], [0]>} : vector<1x8x8xf32>, vector<1x8x8xf32>, vector<1x8x8xf32> -> vector<1x8x8xf32>
    "tpu.trace_stop"() : () -> ()
    %27 = vector.broadcast %25 : vector<1x8x1xf32> to vector<1x8x8xf32>
    %28 = arith.divf %26, %27 : vector<1x8x8xf32>
    %29 = vector.shape_cast %28 : vector<1x8x8xf32> to vector<8x8xf32>
    %30 = vector.extract_strided_slice %13 {offsets = [0, 0, 0], sizes = [1, 8, 32], strides = [1, 1, 1]} : vector<4x8x32xf32> to vector<1x8x32xf32>
    %31 = vector.shape_cast %30 : vector<1x8x32xf32> to vector<8x32xf32>
    %cst_14 = arith.constant dense<0.000000e+00> : vector<8x32xf32>
    %32 = tpu.matmul %29, %31, %cst_14 {dimension_numbers = #tpu.dot_dimension_numbers<[1], [0], [0], [1], [0, 0, 1, 1], [], []>} : vector<8x8xf32>, vector<8x32xf32>, vector<8x32xf32> -> vector<8x32xf32>
    %33 = arith.addf %14, %32 : vector<8x32xf32>
    %34 = vector.extract_strided_slice %8 {offsets = [0, 0, 8], sizes = [1, 8, 8], strides = [1, 1, 1]} : vector<1x8x32xf32> to vector<1x8x8xf32>
    %35 = vector.extract_strided_slice %10 {offsets = [0, 0, 8], sizes = [1, 8, 8], strides = [1, 1, 1]} : vector<1x8x32xf32> to vector<1x8x8xf32>
    %36 = vector.extract_strided_slice %12 {offsets = [0, 0, 8], sizes = [1, 8, 8], strides = [1, 1, 1]} : vector<1x8x32xf32> to vector<1x8x8xf32>
    "tpu.trace_start"() <{level = 10 : i32, message = "bqd,bkd->bqk"}> : () -> ()
    %cst_15 = arith.constant dense<0.000000e+00> : vector<1x8x8xf32>
    %37 = tpu.matmul %34, %35, %cst_15 {dimension_numbers = #tpu.dot_dimension_numbers<[2], [2], [1], [1], [0, 0, 0, 1, 1, 1], [0], [0]>} : vector<1x8x8xf32>, vector<1x8x8xf32>, vector<1x8x8xf32> -> vector<1x8x8xf32>
    "tpu.trace_stop"() : () -> ()
    %cst_16 = arith.constant dense<0xFF800000> : vector<1x8xf32>
    %38 = vector.multi_reduction <maximumf>, %37, %cst_16 [2] : vector<1x8x8xf32> to vector<1x8xf32>
    %39 = vector.shape_cast %38 : vector<1x8xf32> to vector<1x8x1xf32>
    %40 = vector.broadcast %39 : vector<1x8x1xf32> to vector<1x8x8xf32>
    %41 = arith.subf %37, %40 : vector<1x8x8xf32>
    %42 = math.exp %41 : vector<1x8x8xf32>
    %cst_17 = arith.constant dense<0.000000e+00> : vector<1x8xf32>
    %43 = vector.multi_reduction <add>, %42, %cst_17 [2] : vector<1x8x8xf32> to vector<1x8xf32>
    %44 = vector.shape_cast %43 : vector<1x8xf32> to vector<1x8x1xf32>
    "tpu.trace_start"() <{level = 10 : i32, message = "bqk,bkd->bqd"}> : () -> ()
    %cst_18 = arith.constant dense<0.000000e+00> : vector<1x8x8xf32>
    %45 = tpu.matmul %42, %36, %cst_18 {dimension_numbers = #tpu.dot_dimension_numbers<[2], [1], [1], [2], [0, 0, 0, 1, 1, 2], [0], [0]>} : vector<1x8x8xf32>, vector<1x8x8xf32>, vector<1x8x8xf32> -> vector<1x8x8xf32>
    "tpu.trace_stop"() : () -> ()
    %46 = vector.broadcast %44 : vector<1x8x1xf32> to vector<1x8x8xf32>
    %47 = arith.divf %45, %46 : vector<1x8x8xf32>
    %48 = vector.shape_cast %47 : vector<1x8x8xf32> to vector<8x8xf32>
    %49 = vector.extract_strided_slice %13 {offsets = [1, 0, 0], sizes = [1, 8, 32], strides = [1, 1, 1]} : vector<4x8x32xf32> to vector<1x8x32xf32>
    %50 = vector.shape_cast %49 : vector<1x8x32xf32> to vector<8x32xf32>
    %cst_19 = arith.constant dense<0.000000e+00> : vector<8x32xf32>
    %51 = tpu.matmul %48, %50, %cst_19 {dimension_numbers = #tpu.dot_dimension_numbers<[1], [0], [0], [1], [0, 0, 1, 1], [], []>} : vector<8x8xf32>, vector<8x32xf32>, vector<8x32xf32> -> vector<8x32xf32>
    %52 = arith.addf %33, %51 : vector<8x32xf32>
    %53 = vector.extract_strided_slice %8 {offsets = [0, 0, 16], sizes = [1, 8, 8], strides = [1, 1, 1]} : vector<1x8x32xf32> to vector<1x8x8xf32>
    %54 = vector.extract_strided_slice %10 {offsets = [0, 0, 16], sizes = [1, 8, 8], strides = [1, 1, 1]} : vector<1x8x32xf32> to vector<1x8x8xf32>
    %55 = vector.extract_strided_slice %12 {offsets = [0, 0, 16], sizes = [1, 8, 8], strides = [1, 1, 1]} : vector<1x8x32xf32> to vector<1x8x8xf32>
    "tpu.trace_start"() <{level = 10 : i32, message = "bqd,bkd->bqk"}> : () -> ()
    %cst_20 = arith.constant dense<0.000000e+00> : vector<1x8x8xf32>
    %56 = tpu.matmul %53, %54, %cst_20 {dimension_numbers = #tpu.dot_dimension_numbers<[2], [2], [1], [1], [0, 0, 0, 1, 1, 1], [0], [0]>} : vector<1x8x8xf32>, vector<1x8x8xf32>, vector<1x8x8xf32> -> vector<1x8x8xf32>
    "tpu.trace_stop"() : () -> ()
    %cst_21 = arith.constant dense<0xFF800000> : vector<1x8xf32>
    %57 = vector.multi_reduction <maximumf>, %56, %cst_21 [2] : vector<1x8x8xf32> to vector<1x8xf32>
    %58 = vector.shape_cast %57 : vector<1x8xf32> to vector<1x8x1xf32>
    %59 = vector.broadcast %58 : vector<1x8x1xf32> to vector<1x8x8xf32>
    %60 = arith.subf %56, %59 : vector<1x8x8xf32>
    %61 = math.exp %60 : vector<1x8x8xf32>
    %cst_22 = arith.constant dense<0.000000e+00> : vector<1x8xf32>
    %62 = vector.multi_reduction <add>, %61, %cst_22 [2] : vector<1x8x8xf32> to vector<1x8xf32>
    %63 = vector.shape_cast %62 : vector<1x8xf32> to vector<1x8x1xf32>
    "tpu.trace_start"() <{level = 10 : i32, message = "bqk,bkd->bqd"}> : () -> ()
    %cst_23 = arith.constant dense<0.000000e+00> : vector<1x8x8xf32>
    %64 = tpu.matmul %61, %55, %cst_23 {dimension_numbers = #tpu.dot_dimension_numbers<[2], [1], [1], [2], [0, 0, 0, 1, 1, 2], [0], [0]>} : vector<1x8x8xf32>, vector<1x8x8xf32>, vector<1x8x8xf32> -> vector<1x8x8xf32>
    "tpu.trace_stop"() : () -> ()
    %65 = vector.broadcast %63 : vector<1x8x1xf32> to vector<1x8x8xf32>
    %66 = arith.divf %64, %65 : vector<1x8x8xf32>
    %67 = vector.shape_cast %66 : vector<1x8x8xf32> to vector<8x8xf32>
    %68 = vector.extract_strided_slice %13 {offsets = [2, 0, 0], sizes = [1, 8, 32], strides = [1, 1, 1]} : vector<4x8x32xf32> to vector<1x8x32xf32>
    %69 = vector.shape_cast %68 : vector<1x8x32xf32> to vector<8x32xf32>
    %cst_24 = arith.constant dense<0.000000e+00> : vector<8x32xf32>
    %70 = tpu.matmul %67, %69, %cst_24 {dimension_numbers = #tpu.dot_dimension_numbers<[1], [0], [0], [1], [0, 0, 1, 1], [], []>} : vector<8x8xf32>, vector<8x32xf32>, vector<8x32xf32> -> vector<8x32xf32>
    %71 = arith.addf %52, %70 : vector<8x32xf32>
    %72 = vector.extract_strided_slice %8 {offsets = [0, 0, 24], sizes = [1, 8, 8], strides = [1, 1, 1]} : vector<1x8x32xf32> to vector<1x8x8xf32>
    %73 = vector.extract_strided_slice %10 {offsets = [0, 0, 24], sizes = [1, 8, 8], strides = [1, 1, 1]} : vector<1x8x32xf32> to vector<1x8x8xf32>
    %74 = vector.extract_strided_slice %12 {offsets = [0, 0, 24], sizes = [1, 8, 8], strides = [1, 1, 1]} : vector<1x8x32xf32> to vector<1x8x8xf32>
    "tpu.trace_start"() <{level = 10 : i32, message = "bqd,bkd->bqk"}> : () -> ()
    %cst_25 = arith.constant dense<0.000000e+00> : vector<1x8x8xf32>
    %75 = tpu.matmul %72, %73, %cst_25 {dimension_numbers = #tpu.dot_dimension_numbers<[2], [2], [1], [1], [0, 0, 0, 1, 1, 1], [0], [0]>} : vector<1x8x8xf32>, vector<1x8x8xf32>, vector<1x8x8xf32> -> vector<1x8x8xf32>
    "tpu.trace_stop"() : () -> ()
    %cst_26 = arith.constant dense<0xFF800000> : vector<1x8xf32>
    %76 = vector.multi_reduction <maximumf>, %75, %cst_26 [2] : vector<1x8x8xf32> to vector<1x8xf32>
    %77 = vector.shape_cast %76 : vector<1x8xf32> to vector<1x8x1xf32>
    %78 = vector.broadcast %77 : vector<1x8x1xf32> to vector<1x8x8xf32>
    %79 = arith.subf %75, %78 : vector<1x8x8xf32>
    %80 = math.exp %79 : vector<1x8x8xf32>
    %cst_27 = arith.constant dense<0.000000e+00> : vector<1x8xf32>
    %81 = vector.multi_reduction <add>, %80, %cst_27 [2] : vector<1x8x8xf32> to vector<1x8xf32>
    %82 = vector.shape_cast %81 : vector<1x8xf32> to vector<1x8x1xf32>
    "tpu.trace_start"() <{level = 10 : i32, message = "bqk,bkd->bqd"}> : () -> ()
    %cst_28 = arith.constant dense<0.000000e+00> : vector<1x8x8xf32>
    %83 = tpu.matmul %80, %74, %cst_28 {dimension_numbers = #tpu.dot_dimension_numbers<[2], [1], [1], [2], [0, 0, 0, 1, 1, 2], [0], [0]>} : vector<1x8x8xf32>, vector<1x8x8xf32>, vector<1x8x8xf32> -> vector<1x8x8xf32>
    "tpu.trace_stop"() : () -> ()
    %84 = vector.broadcast %82 : vector<1x8x1xf32> to vector<1x8x8xf32>
    %85 = arith.divf %83, %84 : vector<1x8x8xf32>
    %86 = vector.shape_cast %85 : vector<1x8x8xf32> to vector<8x8xf32>
    %87 = vector.extract_strided_slice %13 {offsets = [3, 0, 0], sizes = [1, 8, 32], strides = [1, 1, 1]} : vector<4x8x32xf32> to vector<1x8x32xf32>
    %88 = vector.shape_cast %87 : vector<1x8x32xf32> to vector<8x32xf32>
    %cst_29 = arith.constant dense<0.000000e+00> : vector<8x32xf32>
    %89 = tpu.matmul %86, %88, %cst_29 {dimension_numbers = #tpu.dot_dimension_numbers<[1], [0], [0], [1], [0, 0, 1, 1], [], []>} : vector<8x8xf32>, vector<8x32xf32>, vector<8x32xf32> -> vector<8x32xf32>
    %90 = arith.addf %71, %89 : vector<8x32xf32>
    %c0_30 = arith.constant 0 : index
    %c0_31 = arith.constant 0 : index
    %91 = vector.load %arg5[%c0_30, %c0_31] : memref<1x32xf32, #tpu.memory_space<vmem>>, vector<1x32xf32>
    %92 = vector.broadcast %91 : vector<1x32xf32> to vector<8x32xf32>
    %93 = arith.addf %90, %92 : vector<8x32xf32>
    %94 = arith.addf %1, %93 : vector<8x32xf32>
    %c0_32 = arith.constant 0 : index
    %c0_33 = arith.constant 0 : index
    %95 = vector.load %arg6[%c0_32, %c0_33] : memref<1x32xf32, #tpu.memory_space<vmem>>, vector<1x32xf32>
    %c0_34 = arith.constant 0 : index
    %c0_35 = arith.constant 0 : index
    %96 = vector.load %arg7[%c0_34, %c0_35] : memref<1x32xf32, #tpu.memory_space<vmem>>, vector<1x32xf32>
    %cst_36 = arith.constant dense<0.000000e+00> : vector<8xf32>
    %97 = vector.multi_reduction <add>, %94, %cst_36 [1] : vector<8x32xf32> to vector<8xf32>
    %98 = vector.shape_cast %97 : vector<8xf32> to vector<8x1xf32>
    %cst_37 = arith.constant 3.200000e+01 : f32
    %99 = vector.broadcast %cst_37 : f32 to vector<8x1xf32>
    %100 = arith.divf %98, %99 : vector<8x1xf32>
    %101 = vector.broadcast %100 : vector<8x1xf32> to vector<8x32xf32>
    %102 = arith.subf %94, %101 : vector<8x32xf32>
    %103 = arith.mulf %102, %102 : vector<8x32xf32>
    %cst_38 = arith.constant dense<0.000000e+00> : vector<8xf32>
    %104 = vector.multi_reduction <add>, %103, %cst_38 [1] : vector<8x32xf32> to vector<8xf32>
    %105 = vector.shape_cast %104 : vector<8xf32> to vector<8x1xf32>
    %cst_39 = arith.constant 3.200000e+01 : f32
    %106 = vector.broadcast %cst_39 : f32 to vector<8x1xf32>
    %107 = arith.divf %105, %106 : vector<8x1xf32>
    %108 = vector.broadcast %100 : vector<8x1xf32> to vector<8x32xf32>
    %109 = arith.subf %94, %108 : vector<8x32xf32>
    %cst_40 = arith.constant 9.99999974E-6 : f32
    %110 = vector.broadcast %cst_40 : f32 to vector<8x1xf32>
    %111 = arith.addf %107, %110 : vector<8x1xf32>
    %112 = math.rsqrt %111 : vector<8x1xf32>
    %113 = vector.broadcast %112 : vector<8x1xf32> to vector<8x32xf32>
    %114 = arith.mulf %109, %113 : vector<8x32xf32>
    %115 = vector.broadcast %95 : vector<1x32xf32> to vector<8x32xf32>
    %116 = arith.mulf %114, %115 : vector<8x32xf32>
    %117 = vector.broadcast %96 : vector<1x32xf32> to vector<8x32xf32>
    %118 = arith.addf %116, %117 : vector<8x32xf32>
    %119 = vector.shape_cast %118 : vector<8x32xf32> to vector<1x8x32xf32>
    %c0_41 = arith.constant 0 : index
    %c0_42 = arith.constant 0 : index
    %c0_43 = arith.constant 0 : index
    %120 = vector.load %arg15[%c0_41, %c0_42, %c0_43] : memref<1x8x32xf32, #tpu.memory_space<vmem>>, vector<1x8x32xf32>
    tpu.vector_store %arg15[%c0_41, %c0_42, %c0_43], %119 {strides = array<i32>} : memref<1x8x32xf32, #tpu.memory_space<vmem>>, vector<1x8x32xf32>,
    %c0_44 = arith.constant 0 : index
    %c0_45 = arith.constant 0 : index
    %121 = vector.load %arg8[%c0_44, %c0_45] : memref<32x64xf32, #tpu.memory_space<vmem>>, vector<32x64xf32>
    %cst_46 = arith.constant dense<0.000000e+00> : vector<8x64xf32>
    %122 = tpu.matmul %118, %121, %cst_46 {dimension_numbers = #tpu.dot_dimension_numbers<[1], [0], [0], [1], [0, 0, 1, 1], [], []>} : vector<8x32xf32>, vector<32x64xf32>, vector<8x64xf32> -> vector<8x64xf32>
    %c0_47 = arith.constant 0 : index
    %c0_48 = arith.constant 0 : index
    %123 = vector.load %arg9[%c0_47, %c0_48] : memref<1x64xf32, #tpu.memory_space<vmem>>, vector<1x64xf32>
    %124 = vector.broadcast %123 : vector<1x64xf32> to vector<8x64xf32>
    %125 = arith.addf %122, %124 : vector<8x64xf32>
    %cst_49 = arith.constant 0.000000e+00 : f32
    %126 = vector.broadcast %cst_49 : f32 to vector<8x64xf32>
    %127 = arith.maximumf %125, %126 : vector<8x64xf32>
    %c0_50 = arith.constant 0 : index
    %c0_51 = arith.constant 0 : index
    %128 = vector.load %arg10[%c0_50, %c0_51] : memref<64x32xf32, #tpu.memory_space<vmem>>, vector<64x32xf32>
    %cst_52 = arith.constant dense<0.000000e+00> : vector<8x32xf32>
    %129 = tpu.matmul %127, %128, %cst_52 {dimension_numbers = #tpu.dot_dimension_numbers<[1], [0], [0], [1], [0, 0, 1, 1], [], []>} : vector<8x64xf32>, vector<64x32xf32>, vector<8x32xf32> -> vector<8x32xf32>
    %c0_53 = arith.constant 0 : index
    %c0_54 = arith.constant 0 : index
    %130 = vector.load %arg11[%c0_53, %c0_54] : memref<1x32xf32, #tpu.memory_space<vmem>>, vector<1x32xf32>
    %131 = vector.broadcast %130 : vector<1x32xf32> to vector<8x32xf32>
    %132 = arith.addf %129, %131 : vector<8x32xf32>
    %133 = arith.addf %1, %132 : vector<8x32xf32>
    %c0_55 = arith.constant 0 : index
    %c0_56 = arith.constant 0 : index
    %134 = vector.load %arg12[%c0_55, %c0_56] : memref<1x32xf32, #tpu.memory_space<vmem>>, vector<1x32xf32>
    %c0_57 = arith.constant 0 : index
    %c0_58 = arith.constant 0 : index
    %135 = vector.load %arg13[%c0_57, %c0_58] : memref<1x32xf32, #tpu.memory_space<vmem>>, vector<1x32xf32>
    %cst_59 = arith.constant dense<0.000000e+00> : vector<8xf32>
    %136 = vector.multi_reduction <add>, %133, %cst_59 [1] : vector<8x32xf32> to vector<8xf32>
    %137 = vector.shape_cast %136 : vector<8xf32> to vector<8x1xf32>
    %cst_60 = arith.constant 3.200000e+01 : f32
    %138 = vector.broadcast %cst_60 : f32 to vector<8x1xf32>
    %139 = arith.divf %137, %138 : vector<8x1xf32>
    %140 = vector.broadcast %139 : vector<8x1xf32> to vector<8x32xf32>
    %141 = arith.subf %133, %140 : vector<8x32xf32>
    %142 = arith.mulf %141, %141 : vector<8x32xf32>
    %cst_61 = arith.constant dense<0.000000e+00> : vector<8xf32>
    %143 = vector.multi_reduction <add>, %142, %cst_61 [1] : vector<8x32xf32> to vector<8xf32>
    %144 = vector.shape_cast %143 : vector<8xf32> to vector<8x1xf32>
    %cst_62 = arith.constant 3.200000e+01 : f32
    %145 = vector.broadcast %cst_62 : f32 to vector<8x1xf32>
    %146 = arith.divf %144, %145 : vector<8x1xf32>
    %147 = vector.broadcast %139 : vector<8x1xf32> to vector<8x32xf32>
    %148 = arith.subf %133, %147 : vector<8x32xf32>
    %cst_63 = arith.constant 9.99999974E-6 : f32
    %149 = vector.broadcast %cst_63 : f32 to vector<8x1xf32>
    %150 = arith.addf %146, %149 : vector<8x1xf32>
    %151 = math.rsqrt %150 : vector<8x1xf32>
    %152 = vector.broadcast %151 : vector<8x1xf32> to vector<8x32xf32>
    %153 = arith.mulf %148, %152 : vector<8x32xf32>
    %154 = vector.broadcast %134 : vector<1x32xf32> to vector<8x32xf32>
    %155 = arith.mulf %153, %154 : vector<8x32xf32>
    %156 = vector.broadcast %135 : vector<1x32xf32> to vector<8x32xf32>
    %157 = arith.addf %155, %156 : vector<8x32xf32>
    %158 = vector.shape_cast %157 : vector<8x32xf32> to vector<1x8x32xf32>
    %c0_64 = arith.constant 0 : index
    %c0_65 = arith.constant 0 : index
    %c0_66 = arith.constant 0 : index
    %159 = vector.load %arg14[%c0_64, %c0_65, %c0_66] : memref<1x8x32xf32, #tpu.memory_space<vmem>>, vector<1x8x32xf32>
    tpu.vector_store %arg14[%c0_64, %c0_65, %c0_66], %158 {strides = array<i32>} : memref<1x8x32xf32, #tpu.memory_space<vmem>>, vector<1x8x32xf32>,
    return
  }
  func.func @transform_0(%arg0: i32) -> (i32, i32, i32) {
    %c0_i32 = arith.constant 0 : i32
    %c0_i32_0 = arith.constant 0 : i32
    %c0_i32_1 = arith.constant 0 : i32
    return %arg0, %c0_i32, %c0_i32_0 : i32, i32, i32
  }
  func.func @transform_1(%arg0: i32) -> (i32, i32) {
    %c0_i32 = arith.constant 0 : i32
    %c0_i32_0 = arith.constant 0 : i32
    %c0_i32_1 = arith.constant 0 : i32
    return %c0_i32, %c0_i32_0 : i32, i32
  }
  func.func @transform_2(%arg0: i32) -> (i32, i32) {
    %c0_i32 = arith.constant 0 : i32
    %c0_i32_0 = arith.constant 0 : i32
    %c0_i32_1 = arith.constant 0 : i32
    return %c0_i32, %c0_i32_0 : i32, i32
  }
  func.func @transform_3(%arg0: i32) -> (i32, i32, i32) {
    %c0_i32 = arith.constant 0 : i32
    %c0_i32_0 = arith.constant 0 : i32
    %c0_i32_1 = arith.constant 0 : i32
    %c0_i32_2 = arith.constant 0 : i32
    return %c0_i32, %c0_i32_0, %c0_i32_1 : i32, i32, i32
  }
  func.func @transform_4(%arg0: i32) -> (i32, i32) {
    %c0_i32 = arith.constant 0 : i32
    %c0_i32_0 = arith.constant 0 : i32
    %c0_i32_1 = arith.constant 0 : i32
    return %c0_i32, %c0_i32_0 : i32, i32
  }
  func.func @transform_5(%arg0: i32) -> (i32, i32) {
    %c0_i32 = arith.constant 0 : i32
    %c0_i32_0 = arith.constant 0 : i32
    %c0_i32_1 = arith.constant 0 : i32
    return %c0_i32, %c0_i32_0 : i32, i32
  }
  func.func @transform_6(%arg0: i32) -> (i32, i32) {
    %c0_i32 = arith.constant 0 : i32
    %c0_i32_0 = arith.constant 0 : i32
    %c0_i32_1 = arith.constant 0 : i32
    return %c0_i32, %c0_i32_0 : i32, i32
  }
  func.func @transform_7(%arg0: i32) -> (i32, i32) {
    %c0_i32 = arith.constant 0 : i32
    %c0_i32_0 = arith.constant 0 : i32
    %c0_i32_1 = arith.constant 0 : i32
    return %c0_i32, %c0_i32_0 : i32, i32
  }
  func.func @transform_8(%arg0: i32) -> (i32, i32) {
    %c0_i32 = arith.constant 0 : i32
    %c0_i32_0 = arith.constant 0 : i32
    %c0_i32_1 = arith.constant 0 : i32
    return %c0_i32, %c0_i32_0 : i32, i32
  }
  func.func @transform_9(%arg0: i32) -> (i32, i32) {
    %c0_i32 = arith.constant 0 : i32
    %c0_i32_0 = arith.constant 0 : i32
    %c0_i32_1 = arith.constant 0 : i32
    return %c0_i32, %c0_i32_0 : i32, i32
  }
  func.func @transform_10(%arg0: i32) -> (i32, i32) {
    %c0_i32 = arith.constant 0 : i32
    %c0_i32_0 = arith.constant 0 : i32
    %c0_i32_1 = arith.constant 0 : i32
    return %c0_i32, %c0_i32_0 : i32, i32
  }
  func.func @transform_11(%arg0: i32) -> (i32, i32) {
    %c0_i32 = arith.constant 0 : i32
    %c0_i32_0 = arith.constant 0 : i32
    %c0_i32_1 = arith.constant 0 : i32
    return %c0_i32, %c0_i32_0 : i32, i32
  }
  func.func @transform_12(%arg0: i32) -> (i32, i32) {
    %c0_i32 = arith.constant 0 : i32
    %c0_i32_0 = arith.constant 0 : i32
    %c0_i32_1 = arith.constant 0 : i32
    return %c0_i32, %c0_i32_0 : i32, i32
  }
  func.func @transform_13(%arg0: i32) -> (i32, i32, i32) {
    %c0_i32 = arith.constant 0 : i32
    %c0_i32_0 = arith.constant 0 : i32
    %c0_i32_1 = arith.constant 0 : i32
    return %arg0, %c0_i32, %c0_i32_0 : i32, i32, i32
  }
  func.func @transform_14(%arg0: i32) -> (i32, i32, i32) {
    %c0_i32 = arith.constant 0 : i32
    %c0_i32_0 = arith.constant 0 : i32
    %c0_i32_1 = arith.constant 0 : i32
    return %arg0, %c0_i32, %c0_i32_0 : i32, i32, i32
  }
}

</mosaic_0001>

<bundles_post_ra>
// kernel: tpu_custom_call.1
= control target key start
LH: loop header
LB: loop body
LE: loop exit
PB: predicated region body
PF: predicated region fallthrough
CT: control target
= control target key end

     0   :  { %s3094_s0 = inlined_call_operand.hbm [shape: f32[2,8,32], index: 0, kind: input, shape index: {}]   ;;  %s3095_s1 = inlined_call_operand.vmem [shape: f32[32,96], index: 1, kind: input, shape index: {}]   ;;  %s3096_s2 = inlined_call_operand.vmem [shape: f32[1,96], index: 2, kind: input, shape index: {}]   ;;  %s3097_s3 = inlined_call_operand.vmem [shape: f32[4,8,32], index: 3, kind: input, shape index: {}]   ;;  %s3098_s4 = inlined_call_operand.vmem [shape: f32[1,32], index: 4, kind: input, shape index: {}]   ;;  %s3099_s5 = inlined_call_operand.hbm [shape: f32[1,32], index: 5, kind: input, shape index: {}]   ;;  %s3100_s6 = inlined_call_operand.hbm [shape: f32[1,32], index: 6, kind: input, shape index: {}]   ;;  %s3101_s7 = inlined_call_operand.vmem [shape: f32[32,64], index: 7, kind: input, shape index: {}]   ;;  %s3102_s8 = inlined_call_operand.hbm [shape: f32[1,64], index: 8, kind: input, shape index: {}]   ;;  %s3103_s9 = inlined_call_operand.vmem [shape: f32[64,32], index: 9, kind: input, shape index: {}]   ;;  %s3104_s10 = inlined_call_operand.vmem [shape: f32[1,32], index: 10, kind: input, shape index: {}]   ;;  %s3105_s11 = inlined_call_operand.vmem [shape: f32[1,32], index: 11, kind: input, shape index: {}]   ;;  %s3106_s12 = inlined_call_operand.vmem [shape: f32[1,32], index: 12, kind: input, shape index: {}]   ;;  %s3107_s13 = inlined_call_operand.hbm [shape: f32[2,8,32], index: 13, kind: output, shape index: {0}]   ;;  %s3108_s14 = inlined_call_operand.hbm [shape: f32[2,8,32], index: 14, kind: output, shape index: {1}]  }
   0x1   :  { %3117 = sst [smem:[#allocation20_spill]] %s3094_s0 }
   0x2   :  { %3118 = sst [smem:[#allocation21_spill]] %s3095_s1 }
   0x3   :  { %3119 = sst [smem:[#allocation22_spill]] %s3096_s2 }
   0x4   :  { %3120 = sst [smem:[#allocation23_spill]] %s3105_s11 }
   0x5   :  { %3121 = sst [smem:[#allocation24_spill]] %s3106_s12 }
   0x6   :  { %3122 = sst [smem:[#allocation25_spill]] %s3107_s13 }
   0x7   :  { %3123 = sst [smem:[#allocation26_spill]] %s3108_s14 }
   0x8   :  { %20 = vsyncpa [#allocation3], 0 }
   0x9   :  { %22 = vsyncpa [#allocation3 + $0x1], 0 }
   0xa   :  { %23 = vsyncpa [#allocation6], 0 }
   0xb   :  { %24 = vsyncpa [#allocation9], 0 }
   0xc   :  { %25 = vsyncpa [#allocation4], 0 }
   0xd   :  { %27 = vsyncpa [#allocation4 + $0x1], 0 }
   0xe   :  { %28 = vsyncpa [#allocation12], 0 }
   0xf   :  { %30 = vsyncpa [#allocation12 + $0x1], 0  ;;  %s2633_s29 = smov 0   ;;  %s2635_s30 = smov 0  }
  0x10   :  { %s2637_s15 = smov 0   ;;  %s2639_s16 = smov 0  }
  0x11 LB: > { %3124 = sst [smem:[#allocation18_spill]] %s2524_s29  ;;  %s2654_s17 = sadd.s32 4294967295, %s2536_s16   ;;  %s2536_s16 = sphi %s2639_s16, %s3155_s16   ;;  %s2532_s15 = sphi %s2637_s15, %s3154_s15   ;;  %s2528_s30 = sphi %s2635_s30, %s3153_s30   ;;  %s2524_s29 = sphi %s2633_s29, %s3152_s29  }
  0x12   : > { %s1984_s18 = sadd.s32 4294967294, %s2536_s16   ;;  %p56_p0 = scmp.ne.s32.totalorder %s2528_s30, %s2524_s29 }
  0x13   : > { %p3112_p1 = scmp.eq.s32.totalorder %s2654_s17, 0  ;;  %p338_p3 = scmp.eq.s32.totalorder %s1984_s18, 1 }
  0x14   : > { %p1985_p5 = scmp.ge.s32.totalorder %s2536_s16, 1  ;;  %p371_p7 = scmp.lt.s32.totalorder %s2536_s16, 3 }
  0x15   : > { %p2663_p4 = por %p3112_p1, %p56_p0  ;;  %p2668_p6 = por %p338_p3, %p56_p0 }
  0x16   : > { %p2673_p8 = pnand %p1985_p5, %p371_p7  ;;  %s2538_s22 = smov [#allocation5]  }
  0x17   : > { %s3125_s19 = scalar_select %p2663_p4, 1, 0 }
  0x18   : > { %s3126_s20 = scalar_select %p2668_p6, 1, 0 }
  0x19   : > { %s3128_s21 = scalar_select %p2673_p8, 1, 0 }
  0x1a   : > { %3127 = sst [smem:[#allocation19_spill]] %s3126_s20  ;;  %s396_s23 = sshll.u32 %s2538_s22, 4  ;;  %s397_s23 = int_to_ptr.vmem [resolvable:$true] %s396_s23 }
  0x1b   : > { %p2218_p10 = pneg %p2673_p8  ;;  %s2539_s24 = smov [#allocation7]  }
  0x1c   : > { %s407_s25 = sshll.u32 %s2539_s24, 4  ;;  %s2540_s27 = smov [#allocation8]   ;;  %s2686_s25 = int_to_ptr.vmem [resolvable:$true] %s407_s25 }
  0x1d   : > { %p2682_p11 = pnand %p2218_p10, %p3112_p1  ;;  %s421_s28 = sshll.u32 %s2540_s27, 4  ;;  %s2688_s28 = int_to_ptr.vmem [resolvable:$true] %s421_s28 }
  0x1e   : > { %s2316_s20 = scalar_lea.hbm %s3099_s5, 16 }
  0x1f   : > { %p2317_p12 = scmp.ne.s32.totalorder %s3099_s5, %s2316_s20  ;;  %p2698_p13 = pneg %p2682_p11 }
  0x20   : > { %p2323_p5 = scmp.lt.u32.totalorder %s2316_s20, %s3099_s5 }
  0x21   : > { %p2319_p0 = pnand %p2698_p13, %p2317_p12 }
  0x23   : > { %p2320_p3 = pneg %p2319_p0 }
  0x25   : > { %p2325_p7 = pnand %p2323_p5, %p2320_p3 }
  0x27   : > { %2328 = shalt.err (!%p2325_p7)
}
  0x28   : > { %s2329_s18 = scalar_lea.vmem %s397_s23, 16  ;;  %s2336_s13 = scalar_lea.vmem %s397_s23, 32 }
  0x29   : > { %p2330_p10 = scmp.ne.s32.totalorder %s397_s23, %s2329_s18  ;;  %p2337_p2 = scmp.lt.s32.totalorder %s397_s23, %s397_s23 }
  0x2a   : > { %p2338_p6 = scmp.lt.s32.totalorder %s2336_s13, %s2329_s18 }
  0x2b   : > { %p2332_p9 = pnand %p2330_p10, %p2698_p13 }
  0x2c   : > { %p2339_p4 = por %p2338_p6, %p2337_p2 }
  0x2d   : > { %p2333_p1 = pneg %p2332_p9 }
  0x2f   : > { %p2340_p8 = pnand %p2339_p4, %p2333_p1 }
  0x31   : > { %2343 = shalt.err (!%p2340_p8)
}
  0x32   : > { %2221 = dma.hbm_to_vmem [thread:$0]  (!%p2682_p11), %s3099_s5, 16, %s397_s23, [#allocation6]  }
  0x33   : > { %s2344_s27 = scalar_lea.hbm %s3100_s6, 16 }
  0x34   : > { %p2345_p9 = scmp.ne.s32.totalorder %s3100_s6, %s2344_s27  ;;  %p2351_p1 = scmp.lt.u32.totalorder %s2344_s27, %s3100_s6 }
  0x36   : > { %p2347_p12 = pnand %p2345_p9, %p2698_p13 }
  0x38   : > { %p2348_p2 = pneg %p2347_p12 }
  0x3a   : > { %p2353_p4 = pnand %p2351_p1, %p2348_p2 }
  0x3c   : > { %2356 = shalt.err (!%p2353_p4)
}
  0x3d   : > { %s2357_s23 = scalar_lea.vmem %s2686_s25, 16  ;;  %s2364_s11 = scalar_lea.vmem %s2686_s25, 32 }
  0x3e   : > { %p2358_p6 = scmp.ne.s32.totalorder %s2686_s25, %s2357_s23  ;;  %p2365_p3 = scmp.lt.s32.totalorder %s2686_s25, %s2686_s25 }
  0x3f   : > { %p2366_p5 = scmp.lt.s32.totalorder %s2364_s11, %s2357_s23 }
  0x40   : > { %p2360_p8 = pnand %p2358_p6, %p2698_p13 }
  0x41   : > { %p2367_p7 = por %p2366_p5, %p2365_p3 }
  0x42   : > { %p2361_p0 = pneg %p2360_p8 }
  0x44   : > { %p2368_p10 = pnand %p2367_p7, %p2361_p0 }
  0x46   : > { %2371 = shalt.err (!%p2368_p10)
}
  0x47   : > { %2224 = dma.hbm_to_vmem [thread:$0]  (!%p2682_p11), %s3100_s6, 16, %s2686_s25, [#allocation6]  }
  0x48   : > { %s2372_s20 = scalar_lea.hbm %s3102_s8, 16 }
  0x49   : > { %p2373_p9 = scmp.ne.s32.totalorder %s3102_s8, %s2372_s20  ;;  %p2379_p1 = scmp.lt.u32.totalorder %s2372_s20, %s3102_s8 }
  0x4b   : > { %p2375_p12 = pnand %p2373_p9, %p2698_p13 }
  0x4d   : > { %p2376_p2 = pneg %p2375_p12 }
  0x4f   : > { %p2381_p4 = pnand %p2379_p1, %p2376_p2 }
  0x51   : > { %2384 = shalt.err (!%p2381_p4)
}
  0x52   : > { %s2385_s25 = scalar_lea.vmem %s2688_s28, 16  ;;  %s2392_s11 = scalar_lea.vmem %s2688_s28, 32 }
  0x53   : > { %p2386_p6 = scmp.ne.s32.totalorder %s2688_s28, %s2385_s25  ;;  %p2393_p3 = scmp.lt.s32.totalorder %s2688_s28, %s2688_s28 }
  0x54   : > { %p2394_p5 = scmp.lt.s32.totalorder %s2392_s11, %s2385_s25 }
  0x55   : > { %p2388_p8 = pnand %p2386_p6, %p2698_p13 }
  0x56   : > { %p2395_p7 = por %p2394_p5, %p2393_p3 }
  0x57   : > { %p2389_p0 = pneg %p2388_p8 }
  0x59   : > { %p2396_p10 = pnand %p2395_p7, %p2389_p0 }
  0x5b   : > { %2399 = shalt.err (!%p2396_p10)
}
  0x5c   : > { %2227 = dma.hbm_to_vmem [thread:$0]  (!%p2682_p11), %s3102_s8, 16, %s2688_s28, [#allocation9]  }
  0x5d   : > { %s2763_s24 = sadd.s32 1, %s2536_s16   ;;  %s43_s22 = sadd.s32 1, %s2532_s15 }
  0x5e   : > { %s40_s26 = ssub.s32 %s2536_s16, %s2763_s24  ;;  %p50_p9 = scmp.ne.s32.totalorder %s2532_s15, %s2528_s30 }
  0x5f   : > { %p41_p13 = scmp.eq.s32.totalorder %s40_s26, 0  ;;  %p51_p12 = scmp.eq.s32.totalorder %s2536_s16, 0 }
  0x60   : > { %p2242_p2 = scmp.lt.s32.totalorder %s2536_s16, 2  ;;  %p3131_p4 = scmp.eq.s32.totalorder %s2654_s17, 1 }
  0x61   : > { %s2773_s12 = scalar_select %p41_p13, %s2532_s15, %s43_s22  }
  0x62   : > { %p52_p1 = por %p51_p12, %p50_p9  ;;  %p2777_p6 = por %p3131_p4, %p50_p9 }
  0x63   : > { %s444_s27 = sand.u32 1, %s2532_s15   ;;  %s1991_s18 = sshll.u32 %s2536_s16, 7 }
  0x64   : > { %s1990_s28 = sshll.u32 %s444_s27, 3  ;;  %s3133_s0 = sld [smem:[#allocation20_spill]] }
  0x65   : > { %s448_s11 = scalar_lea.vmem [#allocation2], %s1990_s28  ;;  %p2788_p11 = pnand %p2242_p2, %p52_p1 }
  0x66   : > { %s455_s14 = sshll.u32 %s448_s11, 4  ;;  %s445_s26 = scalar_lea.sflag [#allocation3], %s444_s27  ;;  %s2792_s14 = int_to_ptr.vmem [resolvable:$true] %s455_s14 }
  0x67   : > { %p2402_p0 = pneg %p2788_p11 }
  0x6a   : > { %s2786_s25 = scalar_lea.hbm %s3133_s0, %s1991_s18  ;;  %s2405_s13 = scalar_lea.hbm %s3133_s0, 256 }
  0x6b   : > { %s2400_s22 = scalar_lea.hbm %s2786_s25, 128  ;;  %p2406_p7 = scmp.lt.u32.totalorder %s2786_s25, %s3133_s0 }
  0x6c   : > { %p2401_p8 = scmp.ne.s32.totalorder %s2786_s25, %s2400_s22  ;;  %p2407_p10 = scmp.lt.u32.totalorder %s2405_s13, %s2400_s22 }
  0x6d   : > { %p2409_p9 = scmp.lt.u32.totalorder %s2400_s22, %s2786_s25 }
  0x6e   : > { %p2403_p3 = pnand %p2402_p0, %p2401_p8  ;;  %p2408_p13 = por %p2407_p10, %p2406_p7 }
  0x70   : > { %p2404_p5 = pneg %p2403_p3  ;;  %p2410_p12 = por %p2409_p9, %p2408_p13 }
  0x72   : > { %p2411_p2 = pnand %p2410_p12, %p2404_p5 }
  0x74   : > { %2414 = shalt.err (!%p2411_p2)
}
  0x75   : > { %s2415_s27 = scalar_lea.vmem %s2792_s14, 128  ;;  %s2541_s18 = smov [#allocation2]  }
  0x76   : > { %p2416_p1 = scmp.ne.s32.totalorder %s2792_s14, %s2415_s27  ;;  %s2420_s28 = sshll.u32 %s2541_s18, 4  ;;  %s2421_s28 = int_to_ptr.vmem [resolvable:$false] %s2420_s28 }
  0x77   : > { %s2422_s23 = scalar_lea.vmem %s2421_s28, 256  ;;  %p2423_p3 = scmp.lt.s32.totalorder %s2792_s14, %s2421_s28 }
  0x78   : > { %p2418_p4 = pnand %p2416_p1, %p2402_p0  ;;  %p2424_p7 = scmp.lt.s32.totalorder %s2422_s23, %s2415_s27 }
  0x7a   : > { %p2419_p8 = pneg %p2418_p4  ;;  %p2425_p10 = por %p2424_p7, %p2423_p3 }
  0x7c   : > { %p2426_p13 = pnand %p2425_p10, %p2419_p8 }
  0x7e   : > { %2429 = shalt.err (!%p2426_p13)
}
  0x7f   : > { %2231 = dma.hbm_to_vmem [thread:$0]  (!%p2788_p11), %s2786_s25, 128, %s2792_s14, %s445_s26  }
  0x80   : > { %p3135_p5 = scmp.ne.s32.totalorder %s3128_s21, 0 }
  0x81   : > { %s2822_s22 = sand.u32 (!%p3135_p5), 1, %s2528_s30   ;;  %p3136_p0 = scmp.ne.s32.totalorder (!%p3135_p5), %s3125_s19, 0 }
  0x82   : > { %464 = sbr.rel (%p3135_p5) target bundleno = 3333 (0xd05), region = 72  ;;  %s2825_s13 = sshll.u32 (!%p3135_p5), %s2822_s22, 3 }
  0x83   : > { %s467_s11 = scalar_lea.sflag (!%p3135_p5), [#allocation3], %s2822_s22  ;;  %s470_s27 = scalar_lea.vmem (!%p3135_p5), [#allocation2], %s2825_s13 }
  0x89   : > { %2503 = dma.done.wait (%p3136_p0), %s467_s11, 128  }
  0x8a   : > { %2505 = vsyncadd (%p3136_p0), %s467_s11, 4294967168  ;;  %p3137_p11 = scmp.eq.s32.totalorder %s2654_s17, 0 }
  0x8c   : > { %2507 = dma.done.wait (%p3137_p11), [#allocation6], 32   ;;  %p3138_p9 = pmov %p3137_p11 }
  0x8e   : > { %2509 = vsyncadd (%p3138_p9), [#allocation6], 4294967264  ;;  %p3139_p12 = pmov %p3138_p9 }
  0x8f   : > { %p3140_p2 = pmov %p3138_p9 }
  0x90   : > { %2511 = dma.done.wait (%p3139_p12), [#allocation9], 16  }
  0x91   : > { %2513 = vsyncadd (%p3140_p2), [#allocation9], 4294967280  ;;  %v2542_v0 = vmov 0.0|0.0   ;;  %vm2543_vm0 = vmmov 0   ;;  %v2544_v1 = vmov 0.0   ;;  %s3141_s1 = sld [smem:[#allocation21_spill]] }
  0x92   : > { %2176 = vmatprep.subr.bf16.mxu0 %v2542_v0  ;;  %2083 = vmatprep.mubr.msk.f32.mxu0 %vm2543_vm0, %v2544_v1  ;;  %v2860_v8 = vld [vmem:[%s470_s27] sm:$0xff]  ;;  %vm544_vm1 = vcmask 261120   ;;  %s3142_s2 = sld [smem:[#allocation22_spill]]  ;;  %s2545_s19 = smov 120   ;;  %vm625_vm2 = vcmask 64512   ;;  %vm1716_vm3 = vcmask 523264  }
  0x93   : > { %2091 = vmatprep.subr.mxu1 %v2544_v1  ;;  %2093 = vmatprep.mubr.msk.f32.mxu1 %vm2543_vm0, %v2544_v1  ;;  %s2546_s27 = smov 96   ;;  %s2547_s21 = smov 88   ;;  %v619_v34 = vld [vmem:[%s3097_s3 + $0x8] sm:$0xff]  ;;  %v618_v35 = vld [vmem:[%s3097_s3] sm:$0xff] }
  0x94   : > { %s2548_s25 = smov 56   ;;  %s2549_s14 = smov 64  }
  0x95   : > { %s2550_s29 = smov 80   ;;  %s2551_s26 = smov 112  }
  0x96   : > { %s2552_s18 = smov 48   ;;  %s2553_s28 = smov 72  }
  0x97   : > { %v533_v2 = vld [vmem:[%s3141_s1] sm:$0xff]  ;;  %v534_v3 = vld [vmem:[%s3141_s1 + $0x8] sm:$0xff]  ;;  %v535_v4 = vld [vmem:[%s3141_s1 + $0x10] sm:$0xff] }
  0x98   : > { %v2177_v5 = vpack.c.bf16 %v534_v3, %v533_v2  ;;  %v536_v6 = vld [vmem:[%s3141_s1 + $0x18] sm:$0xff]  ;;  %v1999_v9 = vld [vmem:[%s3142_s2] ss:$0 sm:$0xff]  ;;  %v620_v2 = vld [vmem:[%s3097_s3 + $0x10] sm:$0xff] }
  0x99   : > { %v2180_v7 = vpack.c.bf16 %v536_v6, %v535_v4 }
  0x9a   : > { %2178 = vmatpush3.bf16.msra.mxu0 %v2177_v5 }
  0x9b   : > { %2179 = vmatprep.subr.bf16.mxu0 %v2542_v0 }
  0x9e   : > { %2181 = vmatpush3.bf16.msra.mxu0 %v2180_v7 }
  0x9f   : > { %2086 = vmatprep.subr.mxu0 %v2544_v1 }
  0xa1   : > { %2084 = vmatmul.mubr.msk.f32.vlgmr.msra.gmra.mrb[0].mxu0 %vm544_vm1, %v2860_v8 }
  0xa2   : > { %2088 = vmatprep.mubr.msk.f32.mxu0 %vm2543_vm0, %v2544_v1 }
 0x174   : > { %v614_v10 = vpop.f32.mrb[0].mxu0 }
 0x175   : > { %v2870_v11 = vadd.f32 %v1999_v9, %v614_v10  ;;  %v2085_v12 = vpop.f32.mrb[1].mxu0 }
 0x177   : > { %787 = vrot.lane.b32.xlu1 %v2870_v11, %s2545_s19  ;;  %623 = vrot.lane.b32.xlu0 %v2870_v11, %s2546_s27  ;;  %s1827_s19 = scalar_lea.sflag [#allocation12], %s2822_s22 }
 0x17b   : > { %789 = vrot.lane.b32.xlu0 %v2870_v11, %s2547_s21  ;;  %s2554_s21 = smov 104  }
 0x1e9   : > { %v624_v13 = vpop.permute.xlu0 %623  ;;  %v788_v15 = vpop.permute.xlu1 %787 }
 0x1ea   : > { %2087 = vmatpush3.xpose.msk.msra.mxu0 %vm625_vm2, %v624_v13 }
 0x1eb   : > { %2096 = vmatprep.subr.mxu0 %v2544_v1 }
 0x1ed   : > { %2089 = vmatmul.mubr.msk.f32.vlgmr.msra.gmra.mrb[2].mxu0 %vm625_vm2, %v2870_v11  ;;  %v790_v14 = vpop.permute.xlu0 %789 }
 0x1ee   : > { %2097 = vmatpush3.xpose.msk.msra.mxu0 %vm625_vm2, %v790_v14  ;;  %2098 = vmatprep.mubr.msk.f32.mxu0 %vm2543_vm0, %v2544_v1 }
 0x1ef   : > { %2106 = vmatprep.subr.mxu0 %v2544_v1 }
 0x1f1   : > { %2099 = vmatmul.mubr.msk.f32.vlgmr.msra.gmra.mrb[4].mxu0 %vm625_vm2, %v788_v15 }
 0x1f2   : > { %2108 = vmatprep.mubr.msk.f32.mxu0 %vm2543_vm0, %v2544_v1  ;;  %2107 = vmatpush3.msra.mxu0 %v619_v34 }
 0x1f3   : > { %2116 = vmatprep.subr.mxu0 %v2544_v1 }
 0x2c0   : > { %v696_v16 = vpop.f32.mrb[2].mxu0 }
 0x2c1   : > { %v2090_v17 = vpop.f32.mrb[3].mxu0  ;;  %v700_v18 = vsel %vm625_vm2, %v696_v16, -inf }
 0x2c2   : > { %701 = vmax.xlane.f32.xlu1 %v700_v18 }
 0x2c4   : > { %v861_v19 = vpop.f32.mrb[4].mxu0 }
 0x2c5   : > { %v2100_v20 = vpop.f32.mrb[5].mxu0  ;;  %v865_v21 = vsel %vm625_vm2, %v861_v19, -inf }
 0x2c6   : > { %866 = vmax.xlane.f32.xlu0 %v865_v21  ;;  %v621_v21 = vld [vmem:[%s3097_s3 + $0x18] sm:$0xff] }
 0x2d3   : > { %874 = vrot.lane.b32.xlu1 %v2870_v11, %s2548_s25 }
 0x2dc   : > { %709 = vrot.lane.b32.xlu0 %v2870_v11, %s2549_s14  ;;  %s3116_s14 = sshll.u32 %s2654_s17, 7 }
 0x2e0   : > { %1100 = vrot.lane.b32.xlu0 %v2870_v11, %s2550_s29  ;;  %s2555_s29 = smov 40  }
 0x2e4   : > { %1098 = vrot.lane.b32.xlu0 %v2870_v11, %s2551_s26 }
 0x34f   : > { %v702_v22 = vpop.xlane.xlu1 %701 }
 0x350   : > { %v703_v23 = vsub.f32 %v696_v16, %v702_v22 }
 0x352   : > { %v704_v24 = vmul.f32 1.442695, %v703_v23 }
 0x353   : > { %v867_v25 = vpop.xlane.xlu0 %866  ;;  %v875_v30 = vpop.permute.xlu1 %874 }
 0x354   : > { %2296 = vpow2.f32 %v704_v24  ;;  %v868_v26 = vsub.f32 %v861_v19, %v867_v25 }
 0x356   : > { %v869_v27 = vmul.f32 1.442695, %v868_v26 }
 0x357   : > { %v710_v28 = vpop.permute.xlu0 %709 }
 0x358   : > { %2298 = vpow2.f32 %v869_v27  ;;  %2092 = vmatpush3.msra.mxu1 %v710_v28  ;;  %v2017_v28 = vld [vmem:[%s3098_s4] ss:$0 sm:$0xff] }
 0x359   : > { %2101 = vmatprep.subr.mxu1 %v2544_v1 }
 0x35b   : > { %v1101_v36 = vpop.permute.xlu0 %1100 }
 0x35e   : > { %v2297_v29 = vpop.eup %2296 }
 0x35f   : > { %2094 = vmatmul.mubr.msk.f32.vlgmr.msra.gmra.mrb[0].mxu1 %vm625_vm2, %v2297_v29  ;;  %v706_v31 = vsel %vm625_vm2, %v2297_v29, 0.0  ;;  %v1099_v37 = vpop.permute.xlu0 %1098 }
 0x360   : > { %2102 = vmatpush3.msra.mxu1 %v875_v30  ;;  %707 = vadd.xlane.f32.xlu0 %v706_v31 }
 0x361   : > { %2103 = vmatprep.mubr.msk.f32.mxu1 %vm2543_vm0, %v2544_v1  ;;  %2111 = vmatprep.subr.mxu1 %v2544_v1 }
 0x362   : > { %v2299_v32 = vpop.eup %2298 }
 0x363   : > { %2104 = vmatmul.mubr.msk.f32.vlgmr.msra.gmra.mrb[2].mxu1 %vm625_vm2, %v2299_v32  ;;  %v871_v33 = vsel %vm625_vm2, %v2299_v32, 0.0 }
 0x364   : > { %872 = vadd.xlane.f32.xlu1 %v871_v33  ;;  %2113 = vmatprep.mubr.msk.f32.mxu1 %vm2543_vm0, %v2544_v1 }
 0x365   : > { %2112 = vmatpush3.msra.mxu1 %v618_v35 }
 0x366   : > { %2121 = vmatprep.subr.mxu1 %v2544_v1 }
 0x375   : > { %1185 = vrot.lane.b32.xlu1 %v2870_v11, %s2552_s18  ;;  %s3143_s18 = sld [smem:[#allocation26_spill]] }
 0x376   : > { %1339 = vrot.lane.b32.xlu0 %v2870_v11, %s2553_s28  ;;  %s531_s28 = scalar_lea.vmem [#allocation11], %s2825_s13 }
 0x377   : > { %s1853_s11 = sshll.u32 %s531_s28, 4  ;;  %s1854_s11 = int_to_ptr.vmem [resolvable:$true] %s1853_s11 }
 0x378   : > { %s2430_s27 = scalar_lea.vmem %s1854_s11, 128 }
 0x379   : > { %p2431_p1 = scmp.ne.s32.totalorder %s1854_s11, %s2430_s27 }
 0x37b   : > { %s3017_s23 = scalar_lea.hbm %s3143_s18, %s3116_s14  ;;  %p2432_p4 = pnand %p2431_p1, %p2777_p6 }
 0x37d   : > { %p2433_p8 = pneg %p2432_p4 }
 0x3ed   : > { %v708_v38 = vpop.xlane.xlu0 %707 }
 0x3ee   : > { %2300 = vrcp.f32 %v708_v38 }
 0x3f1   : > { %v873_v39 = vpop.xlane.xlu1 %872  ;;  %v1340_v61 = vpop.permute.xlu0 %1339 }
 0x3f2   : > { %2302 = vrcp.f32 %v873_v39  ;;  %v1617_v39 = vld [vmem:[%s3101_s7 + $0x8] sm:$0xff] }
 0x3f5   : > { %v1186_v44 = vpop.permute.xlu1 %1185 }
 0x3f8   : > { %v2301_v40 = vpop.eup %2300 }
 0x3fc   : > { %v2303_v45 = vpop.eup %2302 }
 0x432   : > { %v781_v41 = vpop.f32.mrb[0].mxu1 }
 0x433   : > { %v786_v42 = vmul.f32 %v2301_v40, %v781_v41  ;;  %v2095_v43 = vpop.f32.mrb[1].mxu1  ;;  %v1618_v41 = vld [vmem:[%s3101_s7 + $0x10] sm:$0xff] }
 0x435   : > { %2114 = vmatmul.mubr.msk.f32.vlgmr.msra.gmra.mrb[4].mxu1 %vm625_vm2, %v786_v42  ;;  %v1619_v42 = vld [vmem:[%s3101_s7 + $0x18] sm:$0xff] }
 0x436   : > { %2122 = vmatpush3.msra.mxu1 %v1186_v44  ;;  %v946_v46 = vpop.f32.mrb[2].mxu1  ;;  %2123 = vmatprep.mubr.msk.f32.mxu1 %vm2543_vm0, %v2544_v1  ;;  %v2186_v43 = vpack.c.bf16 %v1619_v42, %v1618_v41  ;;  %v1701_v44 = vld [vmem:[%s3103_s9] sm:$0xff] }
 0x437   : > { %v951_v47 = vmul.f32 %v2303_v45, %v946_v46  ;;  %v2105_v48 = vpop.f32.mrb[3].mxu1  ;;  %2131 = vmatprep.subr.mxu1 %v2544_v1  ;;  %v1702_v45 = vld [vmem:[%s3103_s9 + $0x8] sm:$0xff]  ;;  %v1703_v46 = vld [vmem:[%s3103_s9 + $0x10] sm:$0xff] }
 0x438   : > { %v1704_v48 = vld [vmem:[%s3103_s9 + $0x18] sm:$0xff] }
 0x439   : > { %2109 = vmatmul.mubr.msk.f32.vlgmr.msra.gmra.mrb[6].mxu0 %vm625_vm2, %v951_v47  ;;  %v2189_v47 = vpack.c.bf16 %v1702_v45, %v1701_v44 }
 0x43a   : > { %2117 = vmatpush3.xpose.msk.msra.mxu0 %vm625_vm2, %v1101_v36  ;;  %2118 = vmatprep.mubr.msk.f32.mxu0 %vm2543_vm0, %v2544_v1 }
 0x43b   : > { %2126 = vmatprep.subr.mxu0 %v2544_v1 }
 0x43d   : > { %2119 = vmatmul.mubr.msk.f32.vlgmr.msra.gmra.mrb[8].mxu0 %vm625_vm2, %v1099_v37 }
 0x43e   : > { %2128 = vmatprep.mubr.msk.f32.mxu0 %vm2543_vm0, %v2544_v1  ;;  %2127 = vmatpush3.msra.mxu0 %v620_v2  ;;  %v2020_v2 = vld [vmem:[#allocation8] ss:$0 sm:$0xff] }
 0x43f   : > { %2136 = vmatprep.subr.mxu0 %v2544_v1 }
 0x508   : > { %v1094_v49 = vpop.f32.mrb[4].mxu1 }
 0x509   : > { %v2115_v50 = vpop.f32.mrb[5].mxu1 }
 0x50a   : > { %v1705_v50 = vld [vmem:[%s3103_s9 + $0x20] sm:$0xff] }
 0x50c   : > { %v1021_v51 = vpop.f32.mrb[6].mxu0 }
 0x50d   : > { %v1095_v52 = vadd.f32 %v1094_v49, %v1021_v51  ;;  %v2110_v53 = vpop.f32.mrb[7].mxu0  ;;  %v2192_v49 = vpack.c.bf16 %v1704_v48, %v1703_v46  ;;  %v1706_v51 = vld [vmem:[%s3103_s9 + $0x28] sm:$0xff] }
 0x510   : > { %v1172_v54 = vpop.f32.mrb[8].mxu0 }
 0x511   : > { %v2120_v55 = vpop.f32.mrb[9].mxu0  ;;  %v1176_v56 = vsel %vm625_vm2, %v1172_v54, -inf }
 0x512   : > { %1177 = vmax.xlane.f32.xlu1 %v1176_v56 }
 0x523   : > { %1337 = vrot.lane.b32.xlu1 %v2870_v11, %s2554_s21  ;;  %s2556_s21 = smov [#allocation11]  }
 0x524   : > { %s2434_s25 = sshll.u32 %s2556_s21, 4  ;;  %s2435_s25 = int_to_ptr.vmem [resolvable:$false] %s2434_s25 }
 0x525   : > { %s2436_s0 = scalar_lea.vmem %s2435_s25, 256  ;;  %p2437_p3 = scmp.lt.s32.totalorder %s1854_s11, %s2435_s25 }
 0x526   : > { %p2438_p7 = scmp.lt.s32.totalorder %s2436_s0, %s2430_s27 }
 0x528   : > { %p2439_p10 = por %p2438_p7, %p2437_p3 }
 0x52a   : > { %p2440_p13 = pnand %p2439_p10, %p2433_p8 }
 0x59f   : > { %v1178_v57 = vpop.xlane.xlu1 %1177 }
 0x5a0   : > { %v1179_v58 = vsub.f32 %v1172_v54, %v1178_v57  ;;  %v2018_v57 = vld [vmem:[#allocation5] ss:$0 sm:$0xff] }
 0x5a2   : > { %v1180_v59 = vmul.f32 1.442695, %v1179_v58 }
 0x5a3   : > { %v1338_v63 = vpop.permute.xlu1 %1337 }
 0x5a4   : > { %2304 = vpow2.f32 %v1180_v59  ;;  %v2019_v59 = vld [vmem:[#allocation7] ss:$0 sm:$0xff] }
 0x5ae   : > { %v2305_v60 = vpop.eup %2304 }
 0x5af   : > { %2124 = vmatmul.mubr.msk.f32.vlgmr.msra.gmra.mrb[6].mxu1 %vm625_vm2, %v2305_v60  ;;  %v1182_v62 = vsel %vm625_vm2, %v2305_v60, 0.0 }
 0x5b0   : > { %2132 = vmatpush3.xpose.msk.msra.mxu1 %vm625_vm2, %v1340_v61  ;;  %1183 = vadd.xlane.f32.xlu1 %v1182_v62  ;;  %v1707_v62 = vld [vmem:[%s3103_s9 + $0x30] sm:$0xff] }
 0x5b1   : > { %2133 = vmatprep.mubr.msk.f32.mxu1 %vm2543_vm0, %v2544_v1  ;;  %2141 = vmatprep.subr.mxu1 %v2544_v1 }
 0x5b3   : > { %2134 = vmatmul.mubr.msk.f32.vlgmr.msra.gmra.mrb[8].mxu1 %vm625_vm2, %v1338_v63 }
 0x5b4   : > { %2143 = vmatprep.mubr.msk.f32.mxu1 %vm2543_vm0, %v2544_v1  ;;  %2142 = vmatpush3.msra.mxu1 %v621_v21 }
 0x5b5   : > { %2188 = vmatprep.subr.bf16.mxu1 %v2542_v0 }
 0x63d   : > { %v1184_v3 = vpop.xlane.xlu1 %1183 }
 0x63e   : > { %2306 = vrcp.f32 %v1184_v3 }
 0x648   : > { %v2307_v4 = vpop.eup %2306 }
 0x682   : > { %v1257_v5 = vpop.f32.mrb[6].mxu1 }
 0x683   : > { %v1262_v6 = vmul.f32 %v2307_v4, %v1257_v5  ;;  %v2125_v7 = vpop.f32.mrb[7].mxu1 }
 0x684   : > { %v2022_v7 = vld [vmem:[%s3104_s10] ss:$0 sm:$0xff] }
 0x685   : > { %2129 = vmatmul.mubr.msk.f32.vlgmr.msra.gmra.mrb[10].mxu0 %vm625_vm2, %v1262_v6 }
 0x686   : > { %v1411_v9 = vpop.f32.mrb[8].mxu1  ;;  %2138 = vmatprep.mubr.msk.f32.mxu0 %vm2543_vm0, %v2544_v1 }
 0x687   : > { %v2135_v10 = vpop.f32.mrb[9].mxu1  ;;  %v1415_v12 = vsel %vm625_vm2, %v1411_v9, -inf }
 0x688   : > { %1416 = vmax.xlane.f32.xlu0 %v1415_v12 }
 0x69e   : > { %1424 = vrot.lane.b32.xlu0 %v2870_v11, %s2555_s29 }
 0x715   : > { %v1417_v13 = vpop.xlane.xlu0 %1416 }
 0x716   : > { %v1418_v14 = vsub.f32 %v1411_v9, %v1417_v13 }
 0x718   : > { %v1419_v15 = vmul.f32 1.442695, %v1418_v14 }
 0x719   : > { %v1425_v16 = vpop.permute.xlu0 %1424 }
 0x71a   : > { %2308 = vpow2.f32 %v1419_v15  ;;  %2137 = vmatpush3.msra.mxu0 %v1425_v16 }
 0x71b   : > { %2182 = vmatprep.subr.bf16.mxu0 %v2542_v0 }
 0x724   : > { %v2309_v17 = vpop.eup %2308 }
 0x725   : > { %2139 = vmatmul.mubr.msk.f32.vlgmr.msra.gmra.mrb[12].mxu0 %vm625_vm2, %v2309_v17  ;;  %v1421_v18 = vsel %vm625_vm2, %v2309_v17, 0.0 }
 0x726   : > { %1422 = vadd.xlane.f32.xlu1 %v1421_v18  ;;  %2154 = vmatprep.mubr.msk.f32.mxu0 %vm2543_vm0, %v2544_v1 }
 0x758   : > { %v1332_v19 = vpop.f32.mrb[10].mxu0 }
 0x759   : > { %v1336_v20 = vadd.f32 %v1332_v19, %v1095_v52  ;;  %v2130_v11 = vpop.f32.mrb[11].mxu0  ;;  %v2195_v52 = vpack.c.bf16 %v1706_v51, %v1705_v50 }
 0x7b3   : > { %v1423_v22 = vpop.xlane.xlu1 %1422 }
 0x7b4   : > { %2310 = vrcp.f32 %v1423_v22 }
 0x7be   : > { %v2311_v23 = vpop.eup %2310 }
 0x7f8   : > { %v1496_v24 = vpop.f32.mrb[12].mxu0 }
 0x7f9   : > { %v1501_v25 = vmul.f32 %v2311_v23, %v1496_v24  ;;  %v2140_v26 = vpop.f32.mrb[13].mxu0 }
 0x7fb   : > { %2144 = vmatmul.mubr.msk.f32.vlgmr.msra.gmra.mrb[10].mxu1 %vm625_vm2, %v1501_v25 }
 0x7fc   : > { %2173 = vmatprep.mubr.msk.f32.mxu1 %vm2543_vm0, %v2544_v1  ;;  %v1616_v1 = vld [vmem:[%s3101_s7] sm:$0xff]  ;;  %2190 = vmatpush3.bf16.msra.mxu1 %v2189_v47 }
 0x7fd   : > { %v2183_v40 = vpack.c.bf16 %v1617_v39, %v1616_v1  ;;  %2191 = vmatprep.subr.bf16.mxu1 %v2542_v0 }
 0x7ff   : > { %2184 = vmatpush3.bf16.msra.mxu0 %v2183_v40 }
 0x800   : > { %2185 = vmatprep.subr.bf16.mxu0 %v2542_v0  ;;  %2193 = vmatpush3.bf16.msra.mxu1 %v2192_v49 }
 0x801   : > { %2194 = vmatprep.subr.bf16.mxu1 %v2542_v0 }
 0x803   : > { %2187 = vmatpush3.bf16.msra.mxu0 %v2186_v43 }
 0x804   : > { %2196 = vmatpush3.bf16.msra.mxu1 %v2195_v52 }
 0x805   : > { %2197 = vmatprep.subr.bf16.mxu1 %v2542_v0  ;;  %v1708_v0 = vld [vmem:[%s3103_s9 + $0x38] sm:$0xff] }
 0x806   : > { %v2198_v63 = vpack.c.bf16 %v1708_v0, %v1707_v62 }
 0x808   : > { %2199 = vmatpush3.bf16.msra.mxu1 %v2198_v63 }
 0x8ce   : > { %v1571_v27 = vpop.f32.mrb[10].mxu1 }
 0x8cf   : > { %v1575_v29 = vadd.f32 %v1571_v27, %v1336_v20  ;;  %v2145_v30 = vpop.f32.mrb[11].mxu1 }
 0x8d1   : > { %v1583_v31 = vadd.f32 %v2017_v28, %v1575_v29 }
 0x8d3   : > { %v1584_v32 = vadd.f32 %v1583_v31, %v2860_v8 }
 0x8d5   : > { %v1587_v33 = vsel %vm544_vm1, %v1584_v32, 0.0 }
 0x8d6   : > { %1588 = vadd.xlane.f32.xlu1 %v1587_v33 }
 0x963   : > { %v1589_v34 = vpop.xlane.xlu1 %1588 }
 0x964   : > { %v1591_v35 = vmul.f32 0.03125, %v1589_v34 }
 0x966   : > { %v1592_v36 = vsub.f32 %v1584_v32, %v1591_v35 }
 0x968   : > { %v1593_v37 = vmul.f32 %v1592_v36, %v1592_v36 }
 0x96a   : > { %v1594_v38 = vsel %vm544_vm1, %v1593_v37, 0.0 }
 0x96b   : > { %1595 = vadd.xlane.f32.xlu1 %v1594_v38 }
 0x9f8   : > { %v1596_v53 = vpop.xlane.xlu1 %1595 }
 0x9f9   : > { %v1597_v54 = vmul.f32 0.03125, %v1596_v53 }
 0x9fb   : > { %v1598_v55 = vadd.f32 1e-05, %v1597_v54 }
 0x9fd   : > { %2312 = vrsqrt.f32 %v1598_v55 }
 0xa07   : > { %v2313_v56 = vpop.eup %2312 }
 0xa08   : > { %v1600_v58 = vmul.f32 %v2313_v56, %v1592_v36 }
 0xa0a   : > { %v1607_v60 = vmul.f32 %v2018_v57, %v1600_v58 }
 0xa0c   : > { %v1614_v61 = vadd.f32 %v2019_v59, %v1607_v60 }
 0xa0e   : > { %2155 = vmatmul.mubr.msk.f32.vlgmr.msra.gmra.mrb[14].mxu0 %vm544_vm1, %v1614_v61  ;;  %1615 = vst.msk [vmem:[%s531_s28] sm:$0xff] %vm544_vm1, %v1614_v61 }
 0xae1   : > { %v1696_v3 = vpop.f32.mrb[14].mxu0 }
 0xae2   : > { %v1697_v4 = vadd.f32 %v2020_v2, %v1696_v3  ;;  %v2156_v5 = vpop.f32.mrb[15].mxu0 }
 0xae4   : > { %v1700_v6 = vmax.f32 %v1697_v4, 0.0 }
 0xae6   : > { %2174 = vmatmul.mubr.msk.f32.vlgmr.msra.gmra.mrb[12].mxu1 %vm1716_vm3, %v1700_v6 }
 0xbb9   : > { %v1786_v9 = vpop.f32.mrb[12].mxu1 }
 0xbba   : > { %v1787_v10 = vadd.f32 %v2022_v7, %v1786_v9  ;;  %v2175_v12 = vpop.f32.mrb[13].mxu1 }
 0xbbc   : > { %v1790_v13 = vadd.f32 %v1787_v10, %v2860_v8 }
 0xbbe   : > { %v1793_v14 = vsel %vm544_vm1, %v1790_v13, 0.0 }
 0xbbf   : > { %1794 = vadd.xlane.f32.xlu1 %v1793_v14 }
 0xc4c   : > { %v1795_v15 = vpop.xlane.xlu1 %1794 }
 0xc4d   : > { %v1796_v16 = vmul.f32 0.03125, %v1795_v15 }
 0xc4f   : > { %v1797_v17 = vsub.f32 %v1790_v13, %v1796_v16 }
 0xc51   : > { %v1798_v18 = vmul.f32 %v1797_v17, %v1797_v17 }
 0xc53   : > { %v1799_v19 = vsel %vm544_vm1, %v1798_v18, 0.0 }
 0xc54   : > { %1800 = vadd.xlane.f32.xlu1 %v1799_v19 }
 0xc55   : > { %2443 = shalt.err (!%p2440_p13)
}
 0xc56   : > { %s2444_s28 = scalar_lea.hbm %s3017_s23, 128  ;;  %s2448_s21 = scalar_lea.hbm %s3143_s18, 256 }
 0xc57   : > { %p2445_p5 = scmp.ne.s32.totalorder %s3017_s23, %s2444_s28  ;;  %p2449_p9 = scmp.lt.u32.totalorder %s3017_s23, %s3143_s18 }
 0xc58   : > { %p2450_p12 = scmp.lt.u32.totalorder %s2448_s21, %s2444_s28  ;;  %p2452_p1 = scmp.lt.u32.totalorder %s2444_s28, %s3017_s23 }
 0xc59   : > { %p2446_p0 = pnand %p2445_p5, %p2777_p6 }
 0xc5a   : > { %p2451_p2 = por %p2450_p12, %p2449_p9 }
 0xc5b   : > { %p2447_p11 = pneg %p2446_p0 }
 0xc5c   : > { %p2453_p4 = por %p2452_p1, %p2451_p2 }
 0xc5e   : > { %p2454_p8 = pnand %p2453_p4, %p2447_p11 }
 0xc60   : > { %2457 = shalt.err (!%p2454_p8)
}
 0xc61   : > { %2215 = dma.vmem_to_hbm [thread:$0]  (%p2777_p6), %s1854_s11, 128, %s3017_s23, %s1827_s19  }
 0xc62   : > { %s3144_s27 = sld [smem:[#allocation23_spill]]  ;;  %s3145_s26 = sld [smem:[#allocation24_spill]] }
 0xc63   : > { %s524_s21 = scalar_lea.vmem [#allocation10], %s2825_s13  ;;  %s3146_s23 = sshll.u32 %s2654_s17, 7 }
 0xc64   : > { %s1840_s25 = sshll.u32 %s524_s21, 4  ;;  %s3147_s1 = sld [smem:[#allocation25_spill]]  ;;  %s3051_s25 = int_to_ptr.vmem [resolvable:$true] %s1840_s25 }
 0xc65   : > { %s1822_s0 = scalar_lea.sflag [#allocation4], %s2822_s22  ;;  %s2458_s14 = scalar_lea.vmem %s3051_s25, 128 }
 0xc66   : > { %p2459_p3 = scmp.ne.s32.totalorder %s3051_s25, %s2458_s14  ;;  %s2557_s13 = smov [#allocation10]  }
 0xc67   : > { %s2462_s17 = sshll.u32 %s2557_s13, 4  ;;  %s2463_s17 = int_to_ptr.vmem [resolvable:$false] %s2462_s17 }
 0xc68   : > { %v2024_v22 = vld [vmem:[%s3144_s27] ss:$0 sm:$0xff]  ;;  %p2460_p7 = pnand %p2459_p3, %p2777_p6  ;;  %s2464_s27 = scalar_lea.vmem %s2463_s17, 256 }
 0xc69   : > { %v2025_v24 = vld [vmem:[%s3145_s26] ss:$0 sm:$0xff]  ;;  %p2465_p13 = scmp.lt.s32.totalorder %s3051_s25, %s2463_s17  ;;  %p2466_p5 = scmp.lt.s32.totalorder %s2464_s27, %s2458_s14 }
 0xc6a   : > { %s3049_s2 = scalar_lea.hbm %s3147_s1, %s3146_s23  ;;  %p2461_p10 = pneg %p2460_p7 }
 0xc6b   : > { %p2467_p0 = por %p2466_p5, %p2465_p13 }
 0xc6d   : > { %p2468_p11 = pnand %p2467_p0, %p2461_p10 }
 0xce1   : > { %v1801_v8 = vpop.xlane.xlu1 %1800 }
 0xce2   : > { %v1802_v20 = vmul.f32 0.03125, %v1801_v8 }
 0xce4   : > { %v1803_v11 = vadd.f32 1e-05, %v1802_v20 }
 0xce6   : > { %2314 = vrsqrt.f32 %v1803_v11 }
 0xcf0   : > { %v2315_v21 = vpop.eup %2314 }
 0xcf1   : > { %v1805_v23 = vmul.f32 %v2315_v21, %v1797_v17 }
 0xcf3   : > { %v1812_v25 = vmul.f32 %v2024_v22, %v1805_v23 }
 0xcf5   : > { %v1819_v26 = vadd.f32 %v2025_v24, %v1812_v25 }
 0xcf7   : > { %1820 = vst.msk [vmem:[%s524_s21] sm:$0xff] %vm544_vm1, %v1819_v26 }
 0xcf8   : > { %2471 = shalt.err (!%p2468_p11)
}
 0xcf9   : > { %s2472_s22 = scalar_lea.hbm %s3049_s2, 128  ;;  %s2476_s26 = scalar_lea.hbm %s3147_s1, 256 }
 0xcfa   : > { %p2473_p9 = scmp.ne.s32.totalorder %s3049_s2, %s2472_s22  ;;  %p2477_p1 = scmp.lt.u32.totalorder %s3049_s2, %s3147_s1 }
 0xcfb   : > { %p2478_p4 = scmp.lt.u32.totalorder %s2476_s26, %s2472_s22  ;;  %p2480_p3 = scmp.lt.u32.totalorder %s2472_s22, %s3049_s2 }
 0xcfc   : > { %p2474_p12 = pnand %p2473_p9, %p2777_p6 }
 0xcfd   : > { %p2479_p8 = por %p2478_p4, %p2477_p1 }
 0xcfe   : > { %p2475_p2 = pneg %p2474_p12 }
 0xcff   : > { %p2481_p7 = por %p2480_p3, %p2479_p8 }
 0xd01   : > { %p2482_p10 = pnand %p2481_p7, %p2475_p2 }
 0xd03   : > { %2485 = shalt.err (!%p2482_p10)
}
 0xd04   : > { %2214 = dma.vmem_to_hbm [thread:$0]  (%p2777_p6), %s3051_s25, 128, %s3049_s2, %s1822_s0  }
 0xd05 PF: > { %s3148_s11 = sld [smem:[#allocation18_spill]]  ;;  %s3149_s19 = sld [smem:[#allocation19_spill]] }
 0xd06   : > { %p3151_p5 = scmp.ge.s32.totalorder %s2536_s16, 2 }
 0xd0b   : > { %s1865_s14 = sand.u32 1, %s3148_s11   ;;  %p3150_p13 = scmp.ne.s32.totalorder %s3149_s19, 0 }
 0xd0c   : > { %s1866_s13 = scalar_lea.sflag [#allocation4], %s1865_s14 }
 0xd0d   : > { %p2233_p0 = pnand %p3151_p5, %p3150_p13 }
 0xd0f   : > { %2515 = dma.done.wait (!%p2233_p0), %s1866_s13, 128  }
 0xd10   : > { %2517 = vsyncadd (!%p2233_p0), %s1866_s13, 4294967168  ;;  %s1875_s17 = scalar_lea.sflag [#allocation12], %s1865_s14 }
 0xd11   : > { %2519 = dma.done.wait (!%p2233_p0), %s1875_s17, 128  }
 0xd12   : > { %2521 = vsyncadd (!%p2233_p0), %s1875_s17, 4294967168  ;;  %p33_p6 = scmp.ge.s32.totalorder %s2763_s24, 4   ;;  %s3152_s29 = smov %s2528_s30 }
 0xd13   : > { %s3153_s30 = smov %s2532_s15  ;;  %s3154_s15 = smov %s2773_s12 }
 0xd14   : > { %s3155_s16 = smov %s2763_s24  ;;  %35 = sbr.rel (!%p33_p6) target bundleno = 17 (0x11), region = 146 }
 0xd1b   :  { %1880 = vsyncpa [#allocation3], 1 }
 0xd1c   :  { %1882 = vsyncpa [#allocation3 + $0x1], 1 }
 0xd1d   :  { %1883 = vsyncpa [#allocation6], 1 }
 0xd1e   :  { %1884 = vsyncpa [#allocation9], 1 }
 0xd1f   :  { %1885 = vsyncpa [#allocation4], 1 }
 0xd20   :  { %1887 = vsyncpa [#allocation4 + $0x1], 1 }
 0xd21   :  { %1888 = vsyncpa [#allocation12], 1 }
 0xd22   :  { %1890 = vsyncpa [#allocation12 + $0x1], 1 }

</bundles_post_ra>
